<compile_context>
chip_gen: v7x
topology: tpu7x:2x2x1
jax: 0.10.0
libtpu: 0.0.40
codegen_flags: <defaults>
</compile_context>

<pallas_src>
import jax
import jax.numpy as jnp
from jax.experimental import pallas as pl
from jax.experimental.pallas import tpu as pltpu

EPS = 1e-5            # PyTorch BatchNorm2d default eps
MATMUL_BF16 = False   # True on v5e/v6e/v7x for full-rate MXU (bf16 operands, f32 acc)


def _pick_nb(N, Cout, HW):
    """Images per grid step: amortize per-step overhead, keep >=2 steps when possible."""
    best = 1
    for nb in range(1, N + 1):
        if N % nb == 0 and nb * Cout * HW * 4 <= (512 << 10):
            best = nb
    if N // best < 2 and N >= 2:
        for nb in range(best, 0, -1):
            if N % nb == 0 and N // nb >= 2:
                best = nb
                break
    return best


def _im2col_conv(b, x_ref, w, el, er, xf_ref, p_ref, Cin_pad, W, HW, PAD):
    """3x3 'same' conv of image `b` of the current block as ONE MXU matmul.

    Builds the (9*Cin_pad, HW) im2col patch matrix from 9 static shifted slices of the
    halo-padded flat image; vertical 'same' padding collapses to flat halo zeros,
    horizontal wrap is killed by the el/er edge masks.  Returns f32 (Cout, HW).
    """
    xf_ref[:, PAD:PAD + HW] = x_ref[b]
    for t in range(9):
        dy, dx = divmod(t, 3)
        s = PAD + (dy - 1) * W + (dx - 1)              # static start offset
        tap = xf_ref[:, s:s + HW]                      # (Cin_pad, HW), f32
        if dx == 0:
            tap = tap * el                             # zero w==0 column (left halo)
        elif dx == 2:
            tap = tap * er                             # zero w==W-1 column (right halo)
        # Full, unmasked (8-aligned) store; cast to bf16 here when MATMUL_BF16.
        p_ref[t * Cin_pad:(t + 1) * Cin_pad, :] = tap.astype(p_ref.dtype)
    return jnp.dot(w, p_ref[...], preferred_element_type=jnp.float32)


def _make_stats_kernel(NB, Cin_pad, W, HW, PAD):
    """Pass 1: per-group (NB images) per-channel mean and centered M2 (no conv writeback)."""
    inv_hw = 1.0 / float(HW)
    inv_nb = 1.0 / float(NB)

    def kernel(x_ref, w_ref, el_ref, er_ref, gmean_ref, gm2_ref, xf_ref, p_ref):
        # Zero only the two halo regions, once per grid step (center rewritten per image).
        xf_ref[:, :PAD] = jnp.zeros((Cin_pad, PAD), jnp.float32)
        xf_ref[:, PAD + HW:] = jnp.zeros((Cin_pad, PAD), jnp.float32)
        el = el_ref[...]
        er = er_ref[...]
        w = w_ref[...]

        means, m2s = [], []
        for b in range(NB):
            conv = _im2col_conv(b, x_ref, w, el, er, xf_ref, p_ref, Cin_pad, W, HW, PAD)
            m = jnp.sum(conv, axis=-1, keepdims=True) * inv_hw       # (Cout, 1)
            d = conv - m
            means.append(m)
            m2s.append(jnp.sum(d * d, axis=-1, keepdims=True))       # (Cout, 1)

        gmean = means[0]
        for m in means[1:]:
            gmean = gmean + m
        gmean = gmean * inv_nb
        gm2 = m2s[0]
        for v in m2s[1:]:
            gm2 = gm2 + v
        if NB > 1:                                     # Chan combine within the group
            extra = (means[0] - gmean) ** 2
            for m in means[1:]:
                extra = extra + (m - gmean) ** 2
            gm2 = gm2 + float(HW) * extra

        gmean_ref[0] = gmean
        gm2_ref[0] = gm2

    return kernel


def _make_fused_kernel(NB, Cin_pad, W, HW, PAD):
    """Pass 2: recompute conv + folded BN (per-channel FMA) + ReLU, lane-dense output."""

    def kernel(x_ref, w_ref, el_ref, er_ref, scale_ref, shift_ref, o_ref, xf_ref, p_ref):
        xf_ref[:, :PAD] = jnp.zeros((Cin_pad, PAD), jnp.float32)
        xf_ref[:, PAD + HW:] = jnp.zeros((Cin_pad, PAD), jnp.float32)
        el = el_ref[...]
        er = er_ref[...]
        w = w_ref[...]
        scale = scale_ref[...]
        shift = shift_ref[...]
        for b in range(NB):
            conv = _im2col_conv(b, x_ref, w, el, er, xf_ref, p_ref, Cin_pad, W, HW, PAD)
            o_ref[b] = jnp.maximum(conv * scale + shift, 0.0).astype(o_ref.dtype)

    return kernel


@jax.jit
def cbrblock_forward(x_nchw, w_oihw, gamma, beta):
    """NCHW in / NCHW out, matching the PyTorch module (training-mode BN)."""
    N, Cin, H, W = x_nchw.shape
    Cout = w_oihw.shape[0]
    HW = H * W
    Cin_pad = ((Cin + 7) // 8) * 8                     # sublane-aligned channel stride
    PAD = ((W + 1 + 127) // 128) * 128                 # flat halo pad, 128-aligned
    XLEN = PAD + HW + PAD
    NB = _pick_nb(N, Cout, HW)
    G = N // NB
    mm_dtype = jnp.bfloat16 if MATMUL_BF16 else jnp.float32

    # Free reshape of contiguous NCHW -> (N, Cin, H*W); pad channels to Cin_pad.
    xflat = x_nchw.reshape(N, Cin, HW).astype(jnp.float32)
    if Cin_pad != Cin:
        xflat = jnp.pad(xflat, ((0, 0), (0, Cin_pad - Cin), (0, 0)))
    # OIHW -> (Cout, kh, kw, ci) -> pad ci -> (Cout, 9*Cin_pad), matching tap row order.
    wk = jnp.transpose(w_oihw.astype(jnp.float32), (0, 2, 3, 1))
    if Cin_pad != Cin:
        wk = jnp.pad(wk, ((0, 0), (0, 0), (0, 0), (0, Cin_pad - Cin)))
    wmat = wk.reshape(Cout, 9 * Cin_pad).astype(mm_dtype)
    # Horizontal-edge masks (f32: v5e VPU has no bf16 VALU; bf16 cast happens on store).
    col = jnp.arange(HW, dtype=jnp.int32) % W
    edge_l = (col != 0).astype(jnp.float32).reshape(1, HW)
    edge_r = (col != W - 1).astype(jnp.float32).reshape(1, HW)

    cparams = pltpu.CompilerParams(
        dimension_semantics=("parallel",),
        vmem_limit_bytes=32 * 1024 * 1024,
    )
    scratch = [
        pltpu.VMEM((Cin_pad, XLEN), jnp.float32),      # halo-padded flat image
        pltpu.VMEM((9 * Cin_pad, HW), mm_dtype),       # im2col patch matrix
    ]

    # ---------------- Pass 1: BN statistics only (no conv writeback) -------------------
    gmean, gm2 = pl.pallas_call(
        _make_stats_kernel(NB, Cin_pad, W, HW, PAD),
        out_shape=(
            jax.ShapeDtypeStruct((G, Cout, 1), jnp.float32),
            jax.ShapeDtypeStruct((G, Cout, 1), jnp.float32),
        ),
        grid_spec=pltpu.PrefetchScalarGridSpec(
            num_scalar_prefetch=0,
            grid=(G,),
            in_specs=[
                pl.BlockSpec((NB, Cin_pad, HW), lambda g: (g, 0, 0)),
                pl.BlockSpec((Cout, 9 * Cin_pad), lambda g: (0, 0)),
                pl.BlockSpec((1, HW), lambda g: (0, 0)),
                pl.BlockSpec((1, HW), lambda g: (0, 0)),
            ],
            out_specs=(
                pl.BlockSpec((1, Cout, 1), lambda g: (g, 0, 0)),
                pl.BlockSpec((1, Cout, 1), lambda g: (g, 0, 0)),
            ),
            scratch_shapes=scratch,
        ),
        compiler_params=cparams,
    )(xflat, wmat, edge_l, edge_r)

    # ---- Chan combine across groups; fold training-mode BN into scale/shift (f32) -----
    mean = jnp.mean(gmean, axis=0)                                       # (Cout, 1)
    m2 = jnp.sum(gm2, axis=0) + float(NB * HW) * jnp.sum((gmean - mean[None]) ** 2, axis=0)
    var = m2 / float(N * HW)                                             # biased variance
    inv_std = jax.lax.rsqrt(var + EPS)
    scale = gamma.reshape(Cout, 1).astype(jnp.float32) * inv_std
    shift = beta.reshape(Cout, 1).astype(jnp.float32) - mean * scale

    # ------------- Pass 2: fused conv recompute + BN + ReLU (final output only) --------
    out_flat = pl.pallas_call(
        _make_fused_kernel(NB, Cin_pad, W, HW, PAD),
        out_shape=jax.ShapeDtypeStruct((N, Cout, HW), x_nchw.dtype),
        grid_spec=pltpu.PrefetchScalarGridSpec(
            num_scalar_prefetch=0,
            grid=(G,),
            in_specs=[
                pl.BlockSpec((NB, Cin_pad, HW), lambda g: (g, 0, 0)),
                pl.BlockSpec((Cout, 9 * Cin_pad), lambda g: (0, 0)),
                pl.BlockSpec((1, HW), lambda g: (0, 0)),
                pl.BlockSpec((1, HW), lambda g: (0, 0)),
                pl.BlockSpec((Cout, 1), lambda g: (0, 0)),
                pl.BlockSpec((Cout, 1), lambda g: (0, 0)),
            ],
            out_specs=pl.BlockSpec((NB, Cout, HW), lambda g: (g, 0, 0)),
            scratch_shapes=scratch,
        ),
        compiler_params=cparams,
    )(xflat, wmat, edge_l, edge_r, scale, shift)

    # Free reshape back to NCHW (kernel already produced channel-major data).
    return out_flat.reshape(N, Cout, H, W)


def reference_forward(x_nchw, w_oihw, gamma, beta):
    """Pure-JAX reference (conv + training-mode BN + ReLU) for verification."""
    y = jax.lax.conv_general_dilated(
        x_nchw, w_oihw, window_strides=(1, 1), padding='SAME',
        dimension_numbers=('NCHW', 'OIHW', 'NCHW'))
    mean = jnp.mean(y, axis=(0, 2, 3), keepdims=True)
    var = jnp.mean((y - mean) ** 2, axis=(0, 2, 3), keepdims=True)
    yhat = (y - mean) * jax.lax.rsqrt(var + EPS)
    yhat = yhat * gamma.reshape(1, -1, 1, 1) + beta.reshape(1, -1, 1, 1)
    return jnp.maximum(yhat, 0.0)


if __name__ == "__main__":
    key = jax.random.PRNGKey(0)
    k_x, k_w = jax.random.split(key)

    # Small deterministic shapes; N=4 exercises multi-image grid steps (NB=2, 2 steps).
    N, Cin, H, W = 4, 4, 16, 16
    Cout = 8

    x = jax.random.normal(k_x, (N, Cin, H, W), dtype=jnp.float32)
    # Conv2d weight, PyTorch shape (Cout, Cin, 3, 3); kaiming-like scale, no bias.
    w = jax.random.normal(k_w, (Cout, Cin, 3, 3), dtype=jnp.float32) * (2.0 / (Cin * 9)) ** 0.5
    # BatchNorm2d default init: gamma = 1, beta = 0.
    gamma = jnp.ones((Cout,), jnp.float32)
    beta = jnp.zeros((Cout,), jnp.float32)

    out = cbrblock_forward(x, w, gamma, beta)
    out = jax.block_until_ready(out)

    ref = reference_forward(x, w, gamma, beta)
    assert out.shape == (N, Cout, H, W)
    tol = 2e-2 if MATMUL_BF16 else 1e-4
    err = jnp.max(jnp.abs(out - ref))
    assert jnp.allclose(out, ref, atol=tol, rtol=tol), f"max err {err}"

    print("KERNEL_OK")
</pallas_src>

<mosaic_0001>
module attributes {stable_mosaic.version = 11 : i64} {
  func.func @kernel(%arg0: i32, %arg1: memref<2x8x256xf32, #tpu.memory_space<vmem>>, %arg2: memref<8x72xf32, #tpu.memory_space<vmem>>, %arg3: memref<1x256xf32, #tpu.memory_space<vmem>>, %arg4: memref<1x256xf32, #tpu.memory_space<vmem>>, %arg5: memref<1x8x1xf32, #tpu.memory_space<vmem>>, %arg6: memref<1x8x1xf32, #tpu.memory_space<vmem>>, %arg7: memref<8x512xf32, #tpu.memory_space<vmem>>, %arg8: memref<72x256xf32, #tpu.memory_space<vmem>>) attributes {dimension_semantics = [#tpu.dimension_semantics<parallel>], iteration_bounds = array<i64: 2>, scalar_prefetch = 0 : i64, scratch_operands = 2 : i64, tpu.core_type = #tpu.core_type<tc>, window_params = [{transform_indices = @transform_0, window_bounds = array<i64: 2, 8, 256>}, {pipeline_mode = #tpu.pipeline_mode<synchronous>, transform_indices = @transform_1, window_bounds = array<i64: 8, 72>}, {pipeline_mode = #tpu.pipeline_mode<synchronous>, transform_indices = @transform_2, window_bounds = array<i64: 1, 256>}, {pipeline_mode = #tpu.pipeline_mode<synchronous>, transform_indices = @transform_3, window_bounds = array<i64: 1, 256>}, {transform_indices = @transform_4, window_bounds = array<i64: 1, 8, 1>}, {transform_indices = @transform_5, window_bounds = array<i64: 1, 8, 1>}]} {
    %cst = arith.constant 0.000000e+00 : f32
    %0 = vector.broadcast %cst : f32 to vector<8x128xf32>
    %c0 = arith.constant 0 : index
    %c0_0 = arith.constant 0 : index
    %1 = vector.load %arg7[%c0, %c0_0] : memref<8x512xf32, #tpu.memory_space<vmem>>, vector<8x128xf32>
    tpu.vector_store %arg7[%c0, %c0_0], %0 {strides = array<i32>} : memref<8x512xf32, #tpu.memory_space<vmem>>, vector<8x128xf32>,
    %cst_1 = arith.constant 0.000000e+00 : f32
    %2 = vector.broadcast %cst_1 : f32 to vector<8x128xf32>
    %c0_2 = arith.constant 0 : index
    %c384 = arith.constant 384 : index
    %3 = vector.load %arg7[%c0_2, %c384] : memref<8x512xf32, #tpu.memory_space<vmem>>, vector<8x128xf32>
    tpu.vector_store %arg7[%c0_2, %c384], %2 {strides = array<i32>} : memref<8x512xf32, #tpu.memory_space<vmem>>, vector<8x128xf32>,
    %c0_3 = arith.constant 0 : index
    %c0_4 = arith.constant 0 : index
    %4 = vector.load %arg3[%c0_3, %c0_4] : memref<1x256xf32, #tpu.memory_space<vmem>>, vector<1x256xf32>
    %c0_5 = arith.constant 0 : index
    %c0_6 = arith.constant 0 : index
    %5 = vector.load %arg4[%c0_5, %c0_6] : memref<1x256xf32, #tpu.memory_space<vmem>>, vector<1x256xf32>
    %c0_7 = arith.constant 0 : index
    %c0_8 = arith.constant 0 : index
    %6 = vector.load %arg2[%c0_7, %c0_8] : memref<8x72xf32, #tpu.memory_space<vmem>>, vector<8x72xf32>
    %c0_9 = arith.constant 0 : index
    %c0_10 = arith.constant 0 : index
    %c0_11 = arith.constant 0 : index
    %7 = vector.load %arg1[%c0_9, %c0_10, %c0_11] : memref<2x8x256xf32, #tpu.memory_space<vmem>>, vector<1x8x256xf32>
    %8 = vector.shape_cast %7 : vector<1x8x256xf32> to vector<8x256xf32>
    %c0_12 = arith.constant 0 : index
    %c128 = arith.constant 128 : index
    %9 = vector.load %arg7[%c0_12, %c128] : memref<8x512xf32, #tpu.memory_space<vmem>>, vector<8x256xf32>
    tpu.vector_store %arg7[%c0_12, %c128], %8 {strides = array<i32>} : memref<8x512xf32, #tpu.memory_space<vmem>>, vector<8x256xf32>,
    %c0_13 = arith.constant 0 : index
    %c111 = arith.constant 111 : index
    %10 = vector.load %arg7[%c0_13, %c111] : memref<8x512xf32, #tpu.memory_space<vmem>>, vector<8x256xf32>
    %11 = vector.broadcast %4 : vector<1x256xf32> to vector<8x256xf32>
    %12 = arith.mulf %10, %11 : vector<8x256xf32>
    %c0_14 = arith.constant 0 : index
    %c0_15 = arith.constant 0 : index
    %13 = vector.load %arg8[%c0_14, %c0_15] : memref<72x256xf32, #tpu.memory_space<vmem>>, vector<8x256xf32>
    tpu.vector_store %arg8[%c0_14, %c0_15], %12 {strides = array<i32>} : memref<72x256xf32, #tpu.memory_space<vmem>>, vector<8x256xf32>,
    %c0_16 = arith.constant 0 : index
    %c112 = arith.constant 112 : index
    %14 = vector.load %arg7[%c0_16, %c112] : memref<8x512xf32, #tpu.memory_space<vmem>>, vector<8x256xf32>
    %c8 = arith.constant 8 : index
    %c0_17 = arith.constant 0 : index
    %15 = vector.load %arg8[%c8, %c0_17] : memref<72x256xf32, #tpu.memory_space<vmem>>, vector<8x256xf32>
    tpu.vector_store %arg8[%c8, %c0_17], %14 {strides = array<i32>} : memref<72x256xf32, #tpu.memory_space<vmem>>, vector<8x256xf32>,
    %c0_18 = arith.constant 0 : index
    %c113 = arith.constant 113 : index
    %16 = vector.load %arg7[%c0_18, %c113] : memref<8x512xf32, #tpu.memory_space<vmem>>, vector<8x256xf32>
    %17 = vector.broadcast %5 : vector<1x256xf32> to vector<8x256xf32>
    %18 = arith.mulf %16, %17 : vector<8x256xf32>
    %c16 = arith.constant 16 : index
    %c0_19 = arith.constant 0 : index
    %19 = vector.load %arg8[%c16, %c0_19] : memref<72x256xf32, #tpu.memory_space<vmem>>, vector<8x256xf32>
    tpu.vector_store %arg8[%c16, %c0_19], %18 {strides = array<i32>} : memref<72x256xf32, #tpu.memory_space<vmem>>, vector<8x256xf32>,
    %c0_20 = arith.constant 0 : index
    %c127 = arith.constant 127 : index
    %20 = vector.load %arg7[%c0_20, %c127] : memref<8x512xf32, #tpu.memory_space<vmem>>, vector<8x256xf32>
    %21 = vector.broadcast %4 : vector<1x256xf32> to vector<8x256xf32>
    %22 = arith.mulf %20, %21 : vector<8x256xf32>
    %c24 = arith.constant 24 : index
    %c0_21 = arith.constant 0 : index
    %23 = vector.load %arg8[%c24, %c0_21] : memref<72x256xf32, #tpu.memory_space<vmem>>, vector<8x256xf32>
    tpu.vector_store %arg8[%c24, %c0_21], %22 {strides = array<i32>} : memref<72x256xf32, #tpu.memory_space<vmem>>, vector<8x256xf32>,
    %c0_22 = arith.constant 0 : index
    %c128_23 = arith.constant 128 : index
    %24 = vector.load %arg7[%c0_22, %c128_23] : memref<8x512xf32, #tpu.memory_space<vmem>>, vector<8x256xf32>
    %c32 = arith.constant 32 : index
    %c0_24 = arith.constant 0 : index
    %25 = vector.load %arg8[%c32, %c0_24] : memref<72x256xf32, #tpu.memory_space<vmem>>, vector<8x256xf32>
    tpu.vector_store %arg8[%c32, %c0_24], %24 {strides = array<i32>} : memref<72x256xf32, #tpu.memory_space<vmem>>, vector<8x256xf32>,
    %c0_25 = arith.constant 0 : index
    %c129 = arith.constant 129 : index
    %26 = vector.load %arg7[%c0_25, %c129] : memref<8x512xf32, #tpu.memory_space<vmem>>, vector<8x256xf32>
    %27 = vector.broadcast %5 : vector<1x256xf32> to vector<8x256xf32>
    %28 = arith.mulf %26, %27 : vector<8x256xf32>
    %c40 = arith.constant 40 : index
    %c0_26 = arith.constant 0 : index
    %29 = vector.load %arg8[%c40, %c0_26] : memref<72x256xf32, #tpu.memory_space<vmem>>, vector<8x256xf32>
    tpu.vector_store %arg8[%c40, %c0_26], %28 {strides = array<i32>} : memref<72x256xf32, #tpu.memory_space<vmem>>, vector<8x256xf32>,
    %c0_27 = arith.constant 0 : index
    %c143 = arith.constant 143 : index
    %30 = vector.load %arg7[%c0_27, %c143] : memref<8x512xf32, #tpu.memory_space<vmem>>, vector<8x256xf32>
    %31 = vector.broadcast %4 : vector<1x256xf32> to vector<8x256xf32>
    %32 = arith.mulf %30, %31 : vector<8x256xf32>
    %c48 = arith.constant 48 : index
    %c0_28 = arith.constant 0 : index
    %33 = vector.load %arg8[%c48, %c0_28] : memref<72x256xf32, #tpu.memory_space<vmem>>, vector<8x256xf32>
    tpu.vector_store %arg8[%c48, %c0_28], %32 {strides = array<i32>} : memref<72x256xf32, #tpu.memory_space<vmem>>, vector<8x256xf32>,
    %c0_29 = arith.constant 0 : index
    %c144 = arith.constant 144 : index
    %34 = vector.load %arg7[%c0_29, %c144] : memref<8x512xf32, #tpu.memory_space<vmem>>, vector<8x256xf32>
    %c56 = arith.constant 56 : index
    %c0_30 = arith.constant 0 : index
    %35 = vector.load %arg8[%c56, %c0_30] : memref<72x256xf32, #tpu.memory_space<vmem>>, vector<8x256xf32>
    tpu.vector_store %arg8[%c56, %c0_30], %34 {strides = array<i32>} : memref<72x256xf32, #tpu.memory_space<vmem>>, vector<8x256xf32>,
    %c0_31 = arith.constant 0 : index
    %c145 = arith.constant 145 : index
    %36 = vector.load %arg7[%c0_31, %c145] : memref<8x512xf32, #tpu.memory_space<vmem>>, vector<8x256xf32>
    %37 = vector.broadcast %5 : vector<1x256xf32> to vector<8x256xf32>
    %38 = arith.mulf %36, %37 : vector<8x256xf32>
    %c64 = arith.constant 64 : index
    %c0_32 = arith.constant 0 : index
    %39 = vector.load %arg8[%c64, %c0_32] : memref<72x256xf32, #tpu.memory_space<vmem>>, vector<8x256xf32>
    tpu.vector_store %arg8[%c64, %c0_32], %38 {strides = array<i32>} : memref<72x256xf32, #tpu.memory_space<vmem>>, vector<8x256xf32>,
    %c0_33 = arith.constant 0 : index
    %c0_34 = arith.constant 0 : index
    %40 = vector.load %arg8[%c0_33, %c0_34] : memref<72x256xf32, #tpu.memory_space<vmem>>, vector<72x256xf32>
    %cst_35 = arith.constant dense<0.000000e+00> : vector<8x256xf32>
    %41 = tpu.matmul %6, %40, %cst_35 {dimension_numbers = #tpu.dot_dimension_numbers<[1], [0], [0], [1], [0, 0, 1, 1], [], []>} : vector<8x72xf32>, vector<72x256xf32>, vector<8x256xf32> -> vector<8x256xf32>
    %cst_36 = arith.constant dense<0.000000e+00> : vector<8xf32>
    %42 = vector.multi_reduction <add>, %41, %cst_36 [1] : vector<8x256xf32> to vector<8xf32>
    %43 = vector.shape_cast %42 : vector<8xf32> to vector<8x1xf32>
    %cst_37 = arith.constant 3.906250e-03 : f32
    %44 = vector.broadcast %cst_37 : f32 to vector<8x1xf32>
    %45 = arith.mulf %43, %44 : vector<8x1xf32>
    %46 = vector.broadcast %45 : vector<8x1xf32> to vector<8x256xf32>
    %47 = arith.subf %41, %46 : vector<8x256xf32>
    %48 = arith.mulf %47, %47 : vector<8x256xf32>
    %cst_38 = arith.constant dense<0.000000e+00> : vector<8xf32>
    %49 = vector.multi_reduction <add>, %48, %cst_38 [1] : vector<8x256xf32> to vector<8xf32>
    %50 = vector.shape_cast %49 : vector<8xf32> to vector<8x1xf32>
    %c1 = arith.constant 1 : index
    %c0_39 = arith.constant 0 : index
    %c0_40 = arith.constant 0 : index
    %51 = vector.load %arg1[%c1, %c0_39, %c0_40] : memref<2x8x256xf32, #tpu.memory_space<vmem>>, vector<1x8x256xf32>
    %52 = vector.shape_cast %51 : vector<1x8x256xf32> to vector<8x256xf32>
    %c0_41 = arith.constant 0 : index
    %c128_42 = arith.constant 128 : index
    %53 = vector.load %arg7[%c0_41, %c128_42] : memref<8x512xf32, #tpu.memory_space<vmem>>, vector<8x256xf32>
    tpu.vector_store %arg7[%c0_41, %c128_42], %52 {strides = array<i32>} : memref<8x512xf32, #tpu.memory_space<vmem>>, vector<8x256xf32>,
    %c0_43 = arith.constant 0 : index
    %c111_44 = arith.constant 111 : index
    %54 = vector.load %arg7[%c0_43, %c111_44] : memref<8x512xf32, #tpu.memory_space<vmem>>, vector<8x256xf32>
    %55 = vector.broadcast %4 : vector<1x256xf32> to vector<8x256xf32>
    %56 = arith.mulf %54, %55 : vector<8x256xf32>
    %c0_45 = arith.constant 0 : index
    %c0_46 = arith.constant 0 : index
    %57 = vector.load %arg8[%c0_45, %c0_46] : memref<72x256xf32, #tpu.memory_space<vmem>>, vector<8x256xf32>
    tpu.vector_store %arg8[%c0_45, %c0_46], %56 {strides = array<i32>} : memref<72x256xf32, #tpu.memory_space<vmem>>, vector<8x256xf32>,
    %c0_47 = arith.constant 0 : index
    %c112_48 = arith.constant 112 : index
    %58 = vector.load %arg7[%c0_47, %c112_48] : memref<8x512xf32, #tpu.memory_space<vmem>>, vector<8x256xf32>
    %c8_49 = arith.constant 8 : index
    %c0_50 = arith.constant 0 : index
    %59 = vector.load %arg8[%c8_49, %c0_50] : memref<72x256xf32, #tpu.memory_space<vmem>>, vector<8x256xf32>
    tpu.vector_store %arg8[%c8_49, %c0_50], %58 {strides = array<i32>} : memref<72x256xf32, #tpu.memory_space<vmem>>, vector<8x256xf32>,
    %c0_51 = arith.constant 0 : index
    %c113_52 = arith.constant 113 : index
    %60 = vector.load %arg7[%c0_51, %c113_52] : memref<8x512xf32, #tpu.memory_space<vmem>>, vector<8x256xf32>
    %61 = vector.broadcast %5 : vector<1x256xf32> to vector<8x256xf32>
    %62 = arith.mulf %60, %61 : vector<8x256xf32>
    %c16_53 = arith.constant 16 : index
    %c0_54 = arith.constant 0 : index
    %63 = vector.load %arg8[%c16_53, %c0_54] : memref<72x256xf32, #tpu.memory_space<vmem>>, vector<8x256xf32>
    tpu.vector_store %arg8[%c16_53, %c0_54], %62 {strides = array<i32>} : memref<72x256xf32, #tpu.memory_space<vmem>>, vector<8x256xf32>,
    %c0_55 = arith.constant 0 : index
    %c127_56 = arith.constant 127 : index
    %64 = vector.load %arg7[%c0_55, %c127_56] : memref<8x512xf32, #tpu.memory_space<vmem>>, vector<8x256xf32>
    %65 = vector.broadcast %4 : vector<1x256xf32> to vector<8x256xf32>
    %66 = arith.mulf %64, %65 : vector<8x256xf32>
    %c24_57 = arith.constant 24 : index
    %c0_58 = arith.constant 0 : index
    %67 = vector.load %arg8[%c24_57, %c0_58] : memref<72x256xf32, #tpu.memory_space<vmem>>, vector<8x256xf32>
    tpu.vector_store %arg8[%c24_57, %c0_58], %66 {strides = array<i32>} : memref<72x256xf32, #tpu.memory_space<vmem>>, vector<8x256xf32>,
    %c0_59 = arith.constant 0 : index
    %c128_60 = arith.constant 128 : index
    %68 = vector.load %arg7[%c0_59, %c128_60] : memref<8x512xf32, #tpu.memory_space<vmem>>, vector<8x256xf32>
    %c32_61 = arith.constant 32 : index
    %c0_62 = arith.constant 0 : index
    %69 = vector.load %arg8[%c32_61, %c0_62] : memref<72x256xf32, #tpu.memory_space<vmem>>, vector<8x256xf32>
    tpu.vector_store %arg8[%c32_61, %c0_62], %68 {strides = array<i32>} : memref<72x256xf32, #tpu.memory_space<vmem>>, vector<8x256xf32>,
    %c0_63 = arith.constant 0 : index
    %c129_64 = arith.constant 129 : index
    %70 = vector.load %arg7[%c0_63, %c129_64] : memref<8x512xf32, #tpu.memory_space<vmem>>, vector<8x256xf32>
    %71 = vector.broadcast %5 : vector<1x256xf32> to vector<8x256xf32>
    %72 = arith.mulf %70, %71 : vector<8x256xf32>
    %c40_65 = arith.constant 40 : index
    %c0_66 = arith.constant 0 : index
    %73 = vector.load %arg8[%c40_65, %c0_66] : memref<72x256xf32, #tpu.memory_space<vmem>>, vector<8x256xf32>
    tpu.vector_store %arg8[%c40_65, %c0_66], %72 {strides = array<i32>} : memref<72x256xf32, #tpu.memory_space<vmem>>, vector<8x256xf32>,
    %c0_67 = arith.constant 0 : index
    %c143_68 = arith.constant 143 : index
    %74 = vector.load %arg7[%c0_67, %c143_68] : memref<8x512xf32, #tpu.memory_space<vmem>>, vector<8x256xf32>
    %75 = vector.broadcast %4 : vector<1x256xf32> to vector<8x256xf32>
    %76 = arith.mulf %74, %75 : vector<8x256xf32>
    %c48_69 = arith.constant 48 : index
    %c0_70 = arith.constant 0 : index
    %77 = vector.load %arg8[%c48_69, %c0_70] : memref<72x256xf32, #tpu.memory_space<vmem>>, vector<8x256xf32>
    tpu.vector_store %arg8[%c48_69, %c0_70], %76 {strides = array<i32>} : memref<72x256xf32, #tpu.memory_space<vmem>>, vector<8x256xf32>,
    %c0_71 = arith.constant 0 : index
    %c144_72 = arith.constant 144 : index
    %78 = vector.load %arg7[%c0_71, %c144_72] : memref<8x512xf32, #tpu.memory_space<vmem>>, vector<8x256xf32>
    %c56_73 = arith.constant 56 : index
    %c0_74 = arith.constant 0 : index
    %79 = vector.load %arg8[%c56_73, %c0_74] : memref<72x256xf32, #tpu.memory_space<vmem>>, vector<8x256xf32>
    tpu.vector_store %arg8[%c56_73, %c0_74], %78 {strides = array<i32>} : memref<72x256xf32, #tpu.memory_space<vmem>>, vector<8x256xf32>,
    %c0_75 = arith.constant 0 : index
    %c145_76 = arith.constant 145 : index
    %80 = vector.load %arg7[%c0_75, %c145_76] : memref<8x512xf32, #tpu.memory_space<vmem>>, vector<8x256xf32>
    %81 = vector.broadcast %5 : vector<1x256xf32> to vector<8x256xf32>
    %82 = arith.mulf %80, %81 : vector<8x256xf32>
    %c64_77 = arith.constant 64 : index
    %c0_78 = arith.constant 0 : index
    %83 = vector.load %arg8[%c64_77, %c0_78] : memref<72x256xf32, #tpu.memory_space<vmem>>, vector<8x256xf32>
    tpu.vector_store %arg8[%c64_77, %c0_78], %82 {strides = array<i32>} : memref<72x256xf32, #tpu.memory_space<vmem>>, vector<8x256xf32>,
    %c0_79 = arith.constant 0 : index
    %c0_80 = arith.constant 0 : index
    %84 = vector.load %arg8[%c0_79, %c0_80] : memref<72x256xf32, #tpu.memory_space<vmem>>, vector<72x256xf32>
    %cst_81 = arith.constant dense<0.000000e+00> : vector<8x256xf32>
    %85 = tpu.matmul %6, %84, %cst_81 {dimension_numbers = #tpu.dot_dimension_numbers<[1], [0], [0], [1], [0, 0, 1, 1], [], []>} : vector<8x72xf32>, vector<72x256xf32>, vector<8x256xf32> -> vector<8x256xf32>
    %cst_82 = arith.constant dense<0.000000e+00> : vector<8xf32>
    %86 = vector.multi_reduction <add>, %85, %cst_82 [1] : vector<8x256xf32> to vector<8xf32>
    %87 = vector.shape_cast %86 : vector<8xf32> to vector<8x1xf32>
    %cst_83 = arith.constant 3.906250e-03 : f32
    %88 = vector.broadcast %cst_83 : f32 to vector<8x1xf32>
    %89 = arith.mulf %87, %88 : vector<8x1xf32>
    %90 = vector.broadcast %89 : vector<8x1xf32> to vector<8x256xf32>
    %91 = arith.subf %85, %90 : vector<8x256xf32>
    %92 = arith.mulf %91, %91 : vector<8x256xf32>
    %cst_84 = arith.constant dense<0.000000e+00> : vector<8xf32>
    %93 = vector.multi_reduction <add>, %92, %cst_84 [1] : vector<8x256xf32> to vector<8xf32>
    %94 = vector.shape_cast %93 : vector<8xf32> to vector<8x1xf32>
    %95 = arith.addf %45, %89 : vector<8x1xf32>
    %cst_85 = arith.constant 5.000000e-01 : f32
    %96 = vector.broadcast %cst_85 : f32 to vector<8x1xf32>
    %97 = arith.mulf %95, %96 : vector<8x1xf32>
    %98 = arith.addf %50, %94 : vector<8x1xf32>
    %99 = arith.subf %45, %97 : vector<8x1xf32>
    %100 = arith.mulf %99, %99 : vector<8x1xf32>
    %101 = arith.subf %89, %97 : vector<8x1xf32>
    %102 = arith.mulf %101, %101 : vector<8x1xf32>
    %103 = arith.addf %100, %102 : vector<8x1xf32>
    %cst_86 = arith.constant 2.560000e+02 : f32
    %104 = vector.broadcast %cst_86 : f32 to vector<8x1xf32>
    %105 = arith.mulf %104, %103 : vector<8x1xf32>
    %106 = arith.addf %98, %105 : vector<8x1xf32>
    %c0_87 = arith.constant 0 : index
    %c0_88 = arith.constant 0 : index
    %c0_89 = arith.constant 0 : index
    %107 = vector.load %arg5[%c0_87, %c0_88, %c0_89] : memref<1x8x1xf32, #tpu.memory_space<vmem>>, vector<1x8x1xf32>
    %108 = vector.shape_cast %107 : vector<1x8x1xf32> to vector<8x1xf32>
    %109 = vector.shape_cast %97 : vector<8x1xf32> to vector<1x8x1xf32>
    tpu.vector_store %arg5[%c0_87, %c0_88, %c0_89], %109 {strides = array<i32>} : memref<1x8x1xf32, #tpu.memory_space<vmem>>, vector<1x8x1xf32>,
    %c0_90 = arith.constant 0 : index
    %c0_91 = arith.constant 0 : index
    %c0_92 = arith.constant 0 : index
    %110 = vector.load %arg6[%c0_90, %c0_91, %c0_92] : memref<1x8x1xf32, #tpu.memory_space<vmem>>, vector<1x8x1xf32>
    %111 = vector.shape_cast %110 : vector<1x8x1xf32> to vector<8x1xf32>
    %112 = vector.shape_cast %106 : vector<8x1xf32> to vector<1x8x1xf32>
    tpu.vector_store %arg6[%c0_90, %c0_91, %c0_92], %112 {strides = array<i32>} : memref<1x8x1xf32, #tpu.memory_space<vmem>>, vector<1x8x1xf32>,
    return
  }
  func.func @transform_0(%arg0: i32) -> (i32, i32, i32) {
    %c0_i32 = arith.constant 0 : i32
    %c0_i32_0 = arith.constant 0 : i32
    %c0_i32_1 = arith.constant 0 : i32
    return %arg0, %c0_i32, %c0_i32_0 : i32, i32, i32
  }
  func.func @transform_1(%arg0: i32) -> (i32, i32) {
    %c0_i32 = arith.constant 0 : i32
    %c0_i32_0 = arith.constant 0 : i32
    %c0_i32_1 = arith.constant 0 : i32
    return %c0_i32, %c0_i32_0 : i32, i32
  }
  func.func @transform_2(%arg0: i32) -> (i32, i32) {
    %c0_i32 = arith.constant 0 : i32
    %c0_i32_0 = arith.constant 0 : i32
    %c0_i32_1 = arith.constant 0 : i32
    return %c0_i32, %c0_i32_0 : i32, i32
  }
  func.func @transform_3(%arg0: i32) -> (i32, i32) {
    %c0_i32 = arith.constant 0 : i32
    %c0_i32_0 = arith.constant 0 : i32
    %c0_i32_1 = arith.constant 0 : i32
    return %c0_i32, %c0_i32_0 : i32, i32
  }
  func.func @transform_4(%arg0: i32) -> (i32, i32, i32) {
    %c0_i32 = arith.constant 0 : i32
    %c0_i32_0 = arith.constant 0 : i32
    %c0_i32_1 = arith.constant 0 : i32
    return %arg0, %c0_i32, %c0_i32_0 : i32, i32, i32
  }
  func.func @transform_5(%arg0: i32) -> (i32, i32, i32) {
    %c0_i32 = arith.constant 0 : i32
    %c0_i32_0 = arith.constant 0 : i32
    %c0_i32_1 = arith.constant 0 : i32
    return %arg0, %c0_i32, %c0_i32_0 : i32, i32, i32
  }
}

module attributes {stable_mosaic.version = 11 : i64} {
  func.func @kernel(%arg0: i32, %arg1: memref<2x8x256xf32, #tpu.memory_space<vmem>>, %arg2: memref<8x72xf32, #tpu.memory_space<vmem>>, %arg3: memref<1x256xf32, #tpu.memory_space<vmem>>, %arg4: memref<1x256xf32, #tpu.memory_space<vmem>>, %arg5: memref<8x1xf32, #tpu.memory_space<vmem>>, %arg6: memref<8x1xf32, #tpu.memory_space<vmem>>, %arg7: memref<2x8x256xf32, #tpu.memory_space<vmem>>, %arg8: memref<8x512xf32, #tpu.memory_space<vmem>>, %arg9: memref<72x256xf32, #tpu.memory_space<vmem>>) attributes {dimension_semantics = [#tpu.dimension_semantics<parallel>], iteration_bounds = array<i64: 2>, scalar_prefetch = 0 : i64, scratch_operands = 2 : i64, tpu.core_type = #tpu.core_type<tc>, window_params = [{transform_indices = @transform_0, window_bounds = array<i64: 2, 8, 256>}, {pipeline_mode = #tpu.pipeline_mode<synchronous>, transform_indices = @transform_1, window_bounds = array<i64: 8, 72>}, {pipeline_mode = #tpu.pipeline_mode<synchronous>, transform_indices = @transform_2, window_bounds = array<i64: 1, 256>}, {pipeline_mode = #tpu.pipeline_mode<synchronous>, transform_indices = @transform_3, window_bounds = array<i64: 1, 256>}, {pipeline_mode = #tpu.pipeline_mode<synchronous>, transform_indices = @transform_4, window_bounds = array<i64: 8, 1>}, {pipeline_mode = #tpu.pipeline_mode<synchronous>, transform_indices = @transform_5, window_bounds = array<i64: 8, 1>}, {transform_indices = @transform_6, window_bounds = array<i64: 2, 8, 256>}]} {
    %cst = arith.constant 0.000000e+00 : f32
    %0 = vector.broadcast %cst : f32 to vector<8x128xf32>
    %c0 = arith.constant 0 : index
    %c0_0 = arith.constant 0 : index
    %1 = vector.load %arg8[%c0, %c0_0] : memref<8x512xf32, #tpu.memory_space<vmem>>, vector<8x128xf32>
    tpu.vector_store %arg8[%c0, %c0_0], %0 {strides = array<i32>} : memref<8x512xf32, #tpu.memory_space<vmem>>, vector<8x128xf32>,
    %cst_1 = arith.constant 0.000000e+00 : f32
    %2 = vector.broadcast %cst_1 : f32 to vector<8x128xf32>
    %c0_2 = arith.constant 0 : index
    %c384 = arith.constant 384 : index
    %3 = vector.load %arg8[%c0_2, %c384] : memref<8x512xf32, #tpu.memory_space<vmem>>, vector<8x128xf32>
    tpu.vector_store %arg8[%c0_2, %c384], %2 {strides = array<i32>} : memref<8x512xf32, #tpu.memory_space<vmem>>, vector<8x128xf32>,
    %c0_3 = arith.constant 0 : index
    %c0_4 = arith.constant 0 : index
    %4 = vector.load %arg3[%c0_3, %c0_4] : memref<1x256xf32, #tpu.memory_space<vmem>>, vector<1x256xf32>
    %c0_5 = arith.constant 0 : index
    %c0_6 = arith.constant 0 : index
    %5 = vector.load %arg4[%c0_5, %c0_6] : memref<1x256xf32, #tpu.memory_space<vmem>>, vector<1x256xf32>
    %c0_7 = arith.constant 0 : index
    %c0_8 = arith.constant 0 : index
    %6 = vector.load %arg2[%c0_7, %c0_8] : memref<8x72xf32, #tpu.memory_space<vmem>>, vector<8x72xf32>
    %c0_9 = arith.constant 0 : index
    %c0_10 = arith.constant 0 : index
    %7 = vector.load %arg5[%c0_9, %c0_10] : memref<8x1xf32, #tpu.memory_space<vmem>>, vector<8x1xf32>
    %c0_11 = arith.constant 0 : index
    %c0_12 = arith.constant 0 : index
    %8 = vector.load %arg6[%c0_11, %c0_12] : memref<8x1xf32, #tpu.memory_space<vmem>>, vector<8x1xf32>
    %c0_13 = arith.constant 0 : index
    %c0_14 = arith.constant 0 : index
    %c0_15 = arith.constant 0 : index
    %9 = vector.load %arg1[%c0_13, %c0_14, %c0_15] : memref<2x8x256xf32, #tpu.memory_space<vmem>>, vector<1x8x256xf32>
    %10 = vector.shape_cast %9 : vector<1x8x256xf32> to vector<8x256xf32>
    %c0_16 = arith.constant 0 : index
    %c128 = arith.constant 128 : index
    %11 = vector.load %arg8[%c0_16, %c128] : memref<8x512xf32, #tpu.memory_space<vmem>>, vector<8x256xf32>
    tpu.vector_store %arg8[%c0_16, %c128], %10 {strides = array<i32>} : memref<8x512xf32, #tpu.memory_space<vmem>>, vector<8x256xf32>,
    %c0_17 = arith.constant 0 : index
    %c111 = arith.constant 111 : index
    %12 = vector.load %arg8[%c0_17, %c111] : memref<8x512xf32, #tpu.memory_space<vmem>>, vector<8x256xf32>
    %13 = vector.broadcast %4 : vector<1x256xf32> to vector<8x256xf32>
    %14 = arith.mulf %12, %13 : vector<8x256xf32>
    %c0_18 = arith.constant 0 : index
    %c0_19 = arith.constant 0 : index
    %15 = vector.load %arg9[%c0_18, %c0_19] : memref<72x256xf32, #tpu.memory_space<vmem>>, vector<8x256xf32>
    tpu.vector_store %arg9[%c0_18, %c0_19], %14 {strides = array<i32>} : memref<72x256xf32, #tpu.memory_space<vmem>>, vector<8x256xf32>,
    %c0_20 = arith.constant 0 : index
    %c112 = arith.constant 112 : index
    %16 = vector.load %arg8[%c0_20, %c112] : memref<8x512xf32, #tpu.memory_space<vmem>>, vector<8x256xf32>
    %c8 = arith.constant 8 : index
    %c0_21 = arith.constant 0 : index
    %17 = vector.load %arg9[%c8, %c0_21] : memref<72x256xf32, #tpu.memory_space<vmem>>, vector<8x256xf32>
    tpu.vector_store %arg9[%c8, %c0_21], %16 {strides = array<i32>} : memref<72x256xf32, #tpu.memory_space<vmem>>, vector<8x256xf32>,
    %c0_22 = arith.constant 0 : index
    %c113 = arith.constant 113 : index
    %18 = vector.load %arg8[%c0_22, %c113] : memref<8x512xf32, #tpu.memory_space<vmem>>, vector<8x256xf32>
    %19 = vector.broadcast %5 : vector<1x256xf32> to vector<8x256xf32>
    %20 = arith.mulf %18, %19 : vector<8x256xf32>
    %c16 = arith.constant 16 : index
    %c0_23 = arith.constant 0 : index
    %21 = vector.load %arg9[%c16, %c0_23] : memref<72x256xf32, #tpu.memory_space<vmem>>, vector<8x256xf32>
    tpu.vector_store %arg9[%c16, %c0_23], %20 {strides = array<i32>} : memref<72x256xf32, #tpu.memory_space<vmem>>, vector<8x256xf32>,
    %c0_24 = arith.constant 0 : index
    %c127 = arith.constant 127 : index
    %22 = vector.load %arg8[%c0_24, %c127] : memref<8x512xf32, #tpu.memory_space<vmem>>, vector<8x256xf32>
    %23 = vector.broadcast %4 : vector<1x256xf32> to vector<8x256xf32>
    %24 = arith.mulf %22, %23 : vector<8x256xf32>
    %c24 = arith.constant 24 : index
    %c0_25 = arith.constant 0 : index
    %25 = vector.load %arg9[%c24, %c0_25] : memref<72x256xf32, #tpu.memory_space<vmem>>, vector<8x256xf32>
    tpu.vector_store %arg9[%c24, %c0_25], %24 {strides = array<i32>} : memref<72x256xf32, #tpu.memory_space<vmem>>, vector<8x256xf32>,
    %c0_26 = arith.constant 0 : index
    %c128_27 = arith.constant 128 : index
    %26 = vector.load %arg8[%c0_26, %c128_27] : memref<8x512xf32, #tpu.memory_space<vmem>>, vector<8x256xf32>
    %c32 = arith.constant 32 : index
    %c0_28 = arith.constant 0 : index
    %27 = vector.load %arg9[%c32, %c0_28] : memref<72x256xf32, #tpu.memory_space<vmem>>, vector<8x256xf32>
    tpu.vector_store %arg9[%c32, %c0_28], %26 {strides = array<i32>} : memref<72x256xf32, #tpu.memory_space<vmem>>, vector<8x256xf32>,
    %c0_29 = arith.constant 0 : index
    %c129 = arith.constant 129 : index
    %28 = vector.load %arg8[%c0_29, %c129] : memref<8x512xf32, #tpu.memory_space<vmem>>, vector<8x256xf32>
    %29 = vector.broadcast %5 : vector<1x256xf32> to vector<8x256xf32>
    %30 = arith.mulf %28, %29 : vector<8x256xf32>
    %c40 = arith.constant 40 : index
    %c0_30 = arith.constant 0 : index
    %31 = vector.load %arg9[%c40, %c0_30] : memref<72x256xf32, #tpu.memory_space<vmem>>, vector<8x256xf32>
    tpu.vector_store %arg9[%c40, %c0_30], %30 {strides = array<i32>} : memref<72x256xf32, #tpu.memory_space<vmem>>, vector<8x256xf32>,
    %c0_31 = arith.constant 0 : index
    %c143 = arith.constant 143 : index
    %32 = vector.load %arg8[%c0_31, %c143] : memref<8x512xf32, #tpu.memory_space<vmem>>, vector<8x256xf32>
    %33 = vector.broadcast %4 : vector<1x256xf32> to vector<8x256xf32>
    %34 = arith.mulf %32, %33 : vector<8x256xf32>
    %c48 = arith.constant 48 : index
    %c0_32 = arith.constant 0 : index
    %35 = vector.load %arg9[%c48, %c0_32] : memref<72x256xf32, #tpu.memory_space<vmem>>, vector<8x256xf32>
    tpu.vector_store %arg9[%c48, %c0_32], %34 {strides = array<i32>} : memref<72x256xf32, #tpu.memory_space<vmem>>, vector<8x256xf32>,
    %c0_33 = arith.constant 0 : index
    %c144 = arith.constant 144 : index
    %36 = vector.load %arg8[%c0_33, %c144] : memref<8x512xf32, #tpu.memory_space<vmem>>, vector<8x256xf32>
    %c56 = arith.constant 56 : index
    %c0_34 = arith.constant 0 : index
    %37 = vector.load %arg9[%c56, %c0_34] : memref<72x256xf32, #tpu.memory_space<vmem>>, vector<8x256xf32>
    tpu.vector_store %arg9[%c56, %c0_34], %36 {strides = array<i32>} : memref<72x256xf32, #tpu.memory_space<vmem>>, vector<8x256xf32>,
    %c0_35 = arith.constant 0 : index
    %c145 = arith.constant 145 : index
    %38 = vector.load %arg8[%c0_35, %c145] : memref<8x512xf32, #tpu.memory_space<vmem>>, vector<8x256xf32>
    %39 = vector.broadcast %5 : vector<1x256xf32> to vector<8x256xf32>
    %40 = arith.mulf %38, %39 : vector<8x256xf32>
    %c64 = arith.constant 64 : index
    %c0_36 = arith.constant 0 : index
    %41 = vector.load %arg9[%c64, %c0_36] : memref<72x256xf32, #tpu.memory_space<vmem>>, vector<8x256xf32>
    tpu.vector_store %arg9[%c64, %c0_36], %40 {strides = array<i32>} : memref<72x256xf32, #tpu.memory_space<vmem>>, vector<8x256xf32>,
    %c0_37 = arith.constant 0 : index
    %c0_38 = arith.constant 0 : index
    %42 = vector.load %arg9[%c0_37, %c0_38] : memref<72x256xf32, #tpu.memory_space<vmem>>, vector<72x256xf32>
    %cst_39 = arith.constant dense<0.000000e+00> : vector<8x256xf32>
    %43 = tpu.matmul %6, %42, %cst_39 {dimension_numbers = #tpu.dot_dimension_numbers<[1], [0], [0], [1], [0, 0, 1, 1], [], []>} : vector<8x72xf32>, vector<72x256xf32>, vector<8x256xf32> -> vector<8x256xf32>
    %44 = vector.broadcast %7 : vector<8x1xf32> to vector<8x256xf32>
    %45 = arith.mulf %43, %44 : vector<8x256xf32>
    %46 = vector.broadcast %8 : vector<8x1xf32> to vector<8x256xf32>
    %47 = arith.addf %45, %46 : vector<8x256xf32>
    %cst_40 = arith.constant 0.000000e+00 : f32
    %48 = vector.broadcast %cst_40 : f32 to vector<8x256xf32>
    %49 = arith.maximumf %47, %48 : vector<8x256xf32>
    %c0_41 = arith.constant 0 : index
    %c0_42 = arith.constant 0 : index
    %c0_43 = arith.constant 0 : index
    %50 = vector.load %arg7[%c0_41, %c0_42, %c0_43] : memref<2x8x256xf32, #tpu.memory_space<vmem>>, vector<1x8x256xf32>
    %51 = vector.shape_cast %50 : vector<1x8x256xf32> to vector<8x256xf32>
    %52 = vector.shape_cast %49 : vector<8x256xf32> to vector<1x8x256xf32>
    tpu.vector_store %arg7[%c0_41, %c0_42, %c0_43], %52 {strides = array<i32>} : memref<2x8x256xf32, #tpu.memory_space<vmem>>, vector<1x8x256xf32>,
    %c1 = arith.constant 1 : index
    %c0_44 = arith.constant 0 : index
    %c0_45 = arith.constant 0 : index
    %53 = vector.load %arg1[%c1, %c0_44, %c0_45] : memref<2x8x256xf32, #tpu.memory_space<vmem>>, vector<1x8x256xf32>
    %54 = vector.shape_cast %53 : vector<1x8x256xf32> to vector<8x256xf32>
    %c0_46 = arith.constant 0 : index
    %c128_47 = arith.constant 128 : index
    %55 = vector.load %arg8[%c0_46, %c128_47] : memref<8x512xf32, #tpu.memory_space<vmem>>, vector<8x256xf32>
    tpu.vector_store %arg8[%c0_46, %c128_47], %54 {strides = array<i32>} : memref<8x512xf32, #tpu.memory_space<vmem>>, vector<8x256xf32>,
    %c0_48 = arith.constant 0 : index
    %c111_49 = arith.constant 111 : index
    %56 = vector.load %arg8[%c0_48, %c111_49] : memref<8x512xf32, #tpu.memory_space<vmem>>, vector<8x256xf32>
    %57 = vector.broadcast %4 : vector<1x256xf32> to vector<8x256xf32>
    %58 = arith.mulf %56, %57 : vector<8x256xf32>
    %c0_50 = arith.constant 0 : index
    %c0_51 = arith.constant 0 : index
    %59 = vector.load %arg9[%c0_50, %c0_51] : memref<72x256xf32, #tpu.memory_space<vmem>>, vector<8x256xf32>
    tpu.vector_store %arg9[%c0_50, %c0_51], %58 {strides = array<i32>} : memref<72x256xf32, #tpu.memory_space<vmem>>, vector<8x256xf32>,
    %c0_52 = arith.constant 0 : index
    %c112_53 = arith.constant 112 : index
    %60 = vector.load %arg8[%c0_52, %c112_53] : memref<8x512xf32, #tpu.memory_space<vmem>>, vector<8x256xf32>
    %c8_54 = arith.constant 8 : index
    %c0_55 = arith.constant 0 : index
    %61 = vector.load %arg9[%c8_54, %c0_55] : memref<72x256xf32, #tpu.memory_space<vmem>>, vector<8x256xf32>
    tpu.vector_store %arg9[%c8_54, %c0_55], %60 {strides = array<i32>} : memref<72x256xf32, #tpu.memory_space<vmem>>, vector<8x256xf32>,
    %c0_56 = arith.constant 0 : index
    %c113_57 = arith.constant 113 : index
    %62 = vector.load %arg8[%c0_56, %c113_57] : memref<8x512xf32, #tpu.memory_space<vmem>>, vector<8x256xf32>
    %63 = vector.broadcast %5 : vector<1x256xf32> to vector<8x256xf32>
    %64 = arith.mulf %62, %63 : vector<8x256xf32>
    %c16_58 = arith.constant 16 : index
    %c0_59 = arith.constant 0 : index
    %65 = vector.load %arg9[%c16_58, %c0_59] : memref<72x256xf32, #tpu.memory_space<vmem>>, vector<8x256xf32>
    tpu.vector_store %arg9[%c16_58, %c0_59], %64 {strides = array<i32>} : memref<72x256xf32, #tpu.memory_space<vmem>>, vector<8x256xf32>,
    %c0_60 = arith.constant 0 : index
    %c127_61 = arith.constant 127 : index
    %66 = vector.load %arg8[%c0_60, %c127_61] : memref<8x512xf32, #tpu.memory_space<vmem>>, vector<8x256xf32>
    %67 = vector.broadcast %4 : vector<1x256xf32> to vector<8x256xf32>
    %68 = arith.mulf %66, %67 : vector<8x256xf32>
    %c24_62 = arith.constant 24 : index
    %c0_63 = arith.constant 0 : index
    %69 = vector.load %arg9[%c24_62, %c0_63] : memref<72x256xf32, #tpu.memory_space<vmem>>, vector<8x256xf32>
    tpu.vector_store %arg9[%c24_62, %c0_63], %68 {strides = array<i32>} : memref<72x256xf32, #tpu.memory_space<vmem>>, vector<8x256xf32>,
    %c0_64 = arith.constant 0 : index
    %c128_65 = arith.constant 128 : index
    %70 = vector.load %arg8[%c0_64, %c128_65] : memref<8x512xf32, #tpu.memory_space<vmem>>, vector<8x256xf32>
    %c32_66 = arith.constant 32 : index
    %c0_67 = arith.constant 0 : index
    %71 = vector.load %arg9[%c32_66, %c0_67] : memref<72x256xf32, #tpu.memory_space<vmem>>, vector<8x256xf32>
    tpu.vector_store %arg9[%c32_66, %c0_67], %70 {strides = array<i32>} : memref<72x256xf32, #tpu.memory_space<vmem>>, vector<8x256xf32>,
    %c0_68 = arith.constant 0 : index
    %c129_69 = arith.constant 129 : index
    %72 = vector.load %arg8[%c0_68, %c129_69] : memref<8x512xf32, #tpu.memory_space<vmem>>, vector<8x256xf32>
    %73 = vector.broadcast %5 : vector<1x256xf32> to vector<8x256xf32>
    %74 = arith.mulf %72, %73 : vector<8x256xf32>
    %c40_70 = arith.constant 40 : index
    %c0_71 = arith.constant 0 : index
    %75 = vector.load %arg9[%c40_70, %c0_71] : memref<72x256xf32, #tpu.memory_space<vmem>>, vector<8x256xf32>
    tpu.vector_store %arg9[%c40_70, %c0_71], %74 {strides = array<i32>} : memref<72x256xf32, #tpu.memory_space<vmem>>, vector<8x256xf32>,
    %c0_72 = arith.constant 0 : index
    %c143_73 = arith.constant 143 : index
    %76 = vector.load %arg8[%c0_72, %c143_73] : memref<8x512xf32, #tpu.memory_space<vmem>>, vector<8x256xf32>
    %77 = vector.broadcast %4 : vector<1x256xf32> to vector<8x256xf32>
    %78 = arith.mulf %76, %77 : vector<8x256xf32>
    %c48_74 = arith.constant 48 : index
    %c0_75 = arith.constant 0 : index
    %79 = vector.load %arg9[%c48_74, %c0_75] : memref<72x256xf32, #tpu.memory_space<vmem>>, vector<8x256xf32>
    tpu.vector_store %arg9[%c48_74, %c0_75], %78 {strides = array<i32>} : memref<72x256xf32, #tpu.memory_space<vmem>>, vector<8x256xf32>,
    %c0_76 = arith.constant 0 : index
    %c144_77 = arith.constant 144 : index
    %80 = vector.load %arg8[%c0_76, %c144_77] : memref<8x512xf32, #tpu.memory_space<vmem>>, vector<8x256xf32>
    %c56_78 = arith.constant 56 : index
    %c0_79 = arith.constant 0 : index
    %81 = vector.load %arg9[%c56_78, %c0_79] : memref<72x256xf32, #tpu.memory_space<vmem>>, vector<8x256xf32>
    tpu.vector_store %arg9[%c56_78, %c0_79], %80 {strides = array<i32>} : memref<72x256xf32, #tpu.memory_space<vmem>>, vector<8x256xf32>,
    %c0_80 = arith.constant 0 : index
    %c145_81 = arith.constant 145 : index
    %82 = vector.load %arg8[%c0_80, %c145_81] : memref<8x512xf32, #tpu.memory_space<vmem>>, vector<8x256xf32>
    %83 = vector.broadcast %5 : vector<1x256xf32> to vector<8x256xf32>
    %84 = arith.mulf %82, %83 : vector<8x256xf32>
    %c64_82 = arith.constant 64 : index
    %c0_83 = arith.constant 0 : index
    %85 = vector.load %arg9[%c64_82, %c0_83] : memref<72x256xf32, #tpu.memory_space<vmem>>, vector<8x256xf32>
    tpu.vector_store %arg9[%c64_82, %c0_83], %84 {strides = array<i32>} : memref<72x256xf32, #tpu.memory_space<vmem>>, vector<8x256xf32>,
    %c0_84 = arith.constant 0 : index
    %c0_85 = arith.constant 0 : index
    %86 = vector.load %arg9[%c0_84, %c0_85] : memref<72x256xf32, #tpu.memory_space<vmem>>, vector<72x256xf32>
    %cst_86 = arith.constant dense<0.000000e+00> : vector<8x256xf32>
    %87 = tpu.matmul %6, %86, %cst_86 {dimension_numbers = #tpu.dot_dimension_numbers<[1], [0], [0], [1], [0, 0, 1, 1], [], []>} : vector<8x72xf32>, vector<72x256xf32>, vector<8x256xf32> -> vector<8x256xf32>
    %88 = vector.broadcast %7 : vector<8x1xf32> to vector<8x256xf32>
    %89 = arith.mulf %87, %88 : vector<8x256xf32>
    %90 = vector.broadcast %8 : vector<8x1xf32> to vector<8x256xf32>
    %91 = arith.addf %89, %90 : vector<8x256xf32>
    %cst_87 = arith.constant 0.000000e+00 : f32
    %92 = vector.broadcast %cst_87 : f32 to vector<8x256xf32>
    %93 = arith.maximumf %91, %92 : vector<8x256xf32>
    %c1_88 = arith.constant 1 : index
    %c0_89 = arith.constant 0 : index
    %c0_90 = arith.constant 0 : index
    %94 = vector.load %arg7[%c1_88, %c0_89, %c0_90] : memref<2x8x256xf32, #tpu.memory_space<vmem>>, vector<1x8x256xf32>
    %95 = vector.shape_cast %94 : vector<1x8x256xf32> to vector<8x256xf32>
    %96 = vector.shape_cast %93 : vector<8x256xf32> to vector<1x8x256xf32>
    tpu.vector_store %arg7[%c1_88, %c0_89, %c0_90], %96 {strides = array<i32>} : memref<2x8x256xf32, #tpu.memory_space<vmem>>, vector<1x8x256xf32>,
    return
  }
  func.func @transform_0(%arg0: i32) -> (i32, i32, i32) {
    %c0_i32 = arith.constant 0 : i32
    %c0_i32_0 = arith.constant 0 : i32
    %c0_i32_1 = arith.constant 0 : i32
    return %arg0, %c0_i32, %c0_i32_0 : i32, i32, i32
  }
  func.func @transform_1(%arg0: i32) -> (i32, i32) {
    %c0_i32 = arith.constant 0 : i32
    %c0_i32_0 = arith.constant 0 : i32
    %c0_i32_1 = arith.constant 0 : i32
    return %c0_i32, %c0_i32_0 : i32, i32
  }
  func.func @transform_2(%arg0: i32) -> (i32, i32) {
    %c0_i32 = arith.constant 0 : i32
    %c0_i32_0 = arith.constant 0 : i32
    %c0_i32_1 = arith.constant 0 : i32
    return %c0_i32, %c0_i32_0 : i32, i32
  }
  func.func @transform_3(%arg0: i32) -> (i32, i32) {
    %c0_i32 = arith.constant 0 : i32
    %c0_i32_0 = arith.constant 0 : i32
    %c0_i32_1 = arith.constant 0 : i32
    return %c0_i32, %c0_i32_0 : i32, i32
  }
  func.func @transform_4(%arg0: i32) -> (i32, i32) {
    %c0_i32 = arith.constant 0 : i32
    %c0_i32_0 = arith.constant 0 : i32
    %c0_i32_1 = arith.constant 0 : i32
    return %c0_i32, %c0_i32_0 : i32, i32
  }
  func.func @transform_5(%arg0: i32) -> (i32, i32) {
    %c0_i32 = arith.constant 0 : i32
    %c0_i32_0 = arith.constant 0 : i32
    %c0_i32_1 = arith.constant 0 : i32
    return %c0_i32, %c0_i32_0 : i32, i32
  }
  func.func @transform_6(%arg0: i32) -> (i32, i32, i32) {
    %c0_i32 = arith.constant 0 : i32
    %c0_i32_0 = arith.constant 0 : i32
    %c0_i32_1 = arith.constant 0 : i32
    return %arg0, %c0_i32, %c0_i32_0 : i32, i32, i32
  }
}

</mosaic_0001>

<bundles_post_ra>
// kernel: cbrblock_forward.2
= control target key start
LH: loop header
LB: loop body
LE: loop exit
PB: predicated region body
PF: predicated region fallthrough
CT: control target
= control target key end

     0   :  { %s1177_s18 = smov 0   ;;  %s1363_s0 = inlined_call_operand.vmem [shape: f32[4,8,256], index: 0, kind: input, shape index: {}]   ;;  %s1364_s1 = inlined_call_operand.vmem [shape: f32[8,72], index: 1, kind: input, shape index: {}]   ;;  %s1365_s2 = inlined_call_operand.vmem [shape: f32[1,256], index: 2, kind: input, shape index: {}]   ;;  %s1366_s3 = inlined_call_operand.vmem [shape: f32[1,256], index: 3, kind: input, shape index: {}]   ;;  %s1367_s4 = inlined_call_operand.vmem [shape: f32[2,8,1], index: 4, kind: output, shape index: {0}]   ;;  %s1368_s5 = inlined_call_operand.vmem [shape: f32[2,8,1], index: 5, kind: output, shape index: {1}]  }
   0x1 LB: > { %s1183_s19 = sadd.s32 4294967295, %s1136_s18   ;;  %p963_p0 = scmp.ge.s32.totalorder %s1136_s18, 1  ;;  %s1136_s18 = sphi %s1177_s18, %s16_s18  }
   0x2   : > { %p192_p1 = scmp.lt.s32.totalorder %s1136_s18, 3 }
   0x4   : > { %p193_p2 = pnand %p963_p0, %p192_p1 }
   0x5   : > { %v252_v0 = vlaneseq (!%p193_p2)  ;;  %v1138_v2 = vmov (!%p193_p2), 0.0   ;;  %v242_v3 = vld [vmem:[%s1366_s3] sm:$0x3] (!%p193_p2)  ;;  %s1139_s24 = smov (!%p193_p2), 113   ;;  %s1140_s25 = smov (!%p193_p2), 111   ;;  %vm264_vm0 = vcmask (!%p193_p2), 908288  }
   0x6   : > { %196 = sbr.rel (%p193_p2) target bundleno = 809 (0x329), region = 36  ;;  %845 = vmatprep.mubr.f32.mxu1 (!%p193_p2), %v1138_v2  ;;  %574 = vmatprep.mubr.f32.mxu0 (!%p193_p2), %v1138_v2  ;;  %v241_v4 = vld [vmem:[%s1365_s2] sm:$0x3] (!%p193_p2)  ;;  %s964_s26 = sshll.u32 (!%p193_p2), %s1183_s19, 1  ;;  %vm354_vm1 = vcmask (!%p193_p2), 1039360   ;;  %vm323_vm2 = vcmask (!%p193_p2), 924672  }
   0x7   : > { %v253_v1 = vshrl.u32 (!%p193_p2), %v252_v0, 7  ;;  %p225_p3 = scmp.lt.s32.totalorder (!%p193_p2), %s964_s26, 3  ;;  %s1141_s27 = smov (!%p193_p2), 127   ;;  %vm371_vm3 = vcmask (!%p193_p2), 7168   ;;  %vm340_vm4 = vcmask (!%p193_p2), 121856   ;;  %vm281_vm5 = vcmask (!%p193_p2), 138240  }
   0x8   : > { %s1142_s29 = smov (!%p193_p2), 1   ;;  %s1143_s8 = smov (!%p193_p2), 15   ;;  %vm300_vm6 = vcmask (!%p193_p2), 130048   ;;  %vm452_vm7 = vcmask (!%p193_p2), 916480   ;;  %vm506_vm8 = vcmask (!%p193_p2), 588800  }
   0x9   : > { %v254_v5 = vsub.s32 (!%p193_p2), 0, %v253_v1  ;;  %v258_v6 = vsub.s32 (!%p193_p2), 1, %v253_v1  ;;  %s1144_s9 = smov (!%p193_p2), 17   ;;  %s1145_s10 = smov (!%p193_p2), 112  }
   0xa   : > { %s1146_s11 = smov (!%p193_p2), 16   ;;  %p231_p4 = scmp.lt.s32.totalorder (!%p193_p2), %s1183_s19, 1 }
   0xb   : > { %v314_v7 = vrot.slane (!%p193_p2), %v242_v3, %v254_v5  ;;  %v255_v8 = vrot.slane (!%p193_p2), %v241_v4, %v254_v5  ;;  %v318_v9 = vrot.slane (!%p193_p2), %v242_v3, %v258_v6  ;;  %v259_v10 = vrot.slane (!%p193_p2), %v241_v4, %v258_v6 }
   0xd   : > { %319 = vrot.lane.b32.xlu1 %v314_v7, %s1139_s24  ;;  %260 = vrot.lane.b32.xlu0 %v255_v8, %s1140_s25  ;;  %s1370_s26 = smov (!%p225_p3, %s964_s26), 3  ;;  %s1372_s19 = smov (!%p231_p4, %s1183_s19), 1 }
   0xe   : > { %s975_s28 = sshll.u32 %s1370_s26, 4  ;;  %s967_s14 = sshll.u32 %s1372_s19, 3 }
   0xf   : > { %s229_s7 = scalar_lea.vmem %s1363_s0, %s975_s28  ;;  %s234_s17 = scalar_lea.vmem %s1367_s4, %s967_s14 }
  0x10   : > { %v1207_v11 = vld [vmem:[%s229_s7 + $0x8] sm:$0xff]  ;;  %v1209_v12 = vld [vmem:[%s229_s7] sm:$0xff]  ;;  %v1216_v15 = vld [vmem:[%s229_s7 + $0x18] sm:$0xff]  ;;  %s238_s21 = scalar_lea.vmem %s1368_s5, %s967_s14 }
  0x11   : > { %321 = vrot.lane.b32.xlu1 %v318_v9, %s1139_s24  ;;  %262 = vrot.lane.b32.xlu0 %v259_v10, %s1140_s25  ;;  %v1040_v13 = vpack.i.bf16 %v1138_v2, %v1207_v11  ;;  %v1025_v14 = vpack.i.bf16 %v1207_v11, %v1209_v12  ;;  %v1218_v16 = vld [vmem:[%s229_s7 + $0x10] sm:$0xff]  ;;  %v1045_v17 = vpack.i.bf16 %v1138_v2, %v1216_v15 }
  0x12   : > { %v1030_v18 = vpack.i.bf16 %v1216_v15, %v1218_v16  ;;  %v1050_v19 = vpack.i.bf16 %v1218_v16, %v1209_v12 }
  0x15   : > { %352 = vrot.lane.b32.xlu1 %v259_v10, %s1141_s27  ;;  %350 = vrot.lane.b32.xlu0 %v255_v8, %s1141_s27 }
  0x19   : > { %387 = vrot.lane.b32.xlu1 %v318_v9, %s1142_s29  ;;  %385 = vrot.lane.b32.xlu0 %v314_v7, %s1142_s29 }
  0x1d   : > { %416 = vrot.lane.b32.xlu1 %v259_v10, %s1143_s8  ;;  %414 = vrot.lane.b32.xlu0 %v255_v8, %s1143_s8 }
  0x21   : > { %464 = vrot.lane.b32.xlu1 %v318_v9, %s1144_s9  ;;  %462 = vrot.lane.b32.xlu0 %v314_v7, %s1144_s9 }
  0x25   : > { %1041 = vrot.lane.b32.xlu0 %v1040_v13, %s1145_s10  ;;  %1026 = vrot.lane.b32.xlu1 %v1025_v14, %s1146_s11 }
  0x29   : > { %1046 = vrot.lane.b32.xlu0 %v1045_v17, %s1145_s10  ;;  %1031 = vrot.lane.b32.xlu1 %v1030_v18, %s1146_s11 }
  0x2d   : > { %1051 = vrot.lane.b32.xlu0 %v1050_v19, %s1145_s10  ;;  %1036 = vrot.lane.b32.xlu1 %v1138_v2, %s1146_s11 }
  0x7f   : > { %v320_v20 = vpop.permute.xlu1 %319  ;;  %v261_v21 = vpop.permute.xlu0 %260 }
  0x80   : > { %v328_v22 = vmul.f32 0.0, %v320_v20  ;;  %v269_v23 = vmul.f32 0.0, %v261_v21 }
  0x82   : > { %v1055_v24 = vpack.i.bf16 %v269_v23, %v269_v23  ;;  %v1060_v26 = vpack.i.bf16 %v328_v22, %v328_v22 }
  0x83   : > { %v263_v25 = vpop.permute.xlu0 %262  ;;  %v322_v27 = vpop.permute.xlu1 %321 }
  0x84   : > { %1056 = vrot.lane.b32.xlu0 %v1055_v24, %s1144_s9  ;;  %v265_v31 = vsel %vm264_vm0, %v261_v21, %v263_v25  ;;  %v271_v37 = vmul.f32 %v263_v25, %v1207_v11  ;;  %v324_v43 = vsel %vm323_vm2, %v320_v20, %v322_v27  ;;  %v602_v45 = vmul.f32 %v1216_v15, %v263_v25 }
  0x85   : > { %v270_v36 = vmul.f32 %v265_v31, %v1209_v12  ;;  %v601_v44 = vmul.f32 %v1218_v16, %v265_v31  ;;  %v329_v51 = vmul.f32 %v324_v43, %v1209_v12  ;;  %v330_v52 = vmul.f32 %v322_v27, %v1207_v11 }
  0x86   : > { %v640_v59 = vmul.f32 %v1218_v16, %v324_v43  ;;  %v641_v60 = vmul.f32 %v1216_v15, %v322_v27 }
  0x87   : > { %v351_v28 = vpop.permute.xlu0 %350  ;;  %v353_v33 = vpop.permute.xlu1 %352  ;;  %v1080_v50 = vpack.i.bf16 %v271_v37, %v270_v36  ;;  %v1085_v56 = vpack.i.bf16 %v602_v45, %v601_v44  ;;  %v1090_v0 = vpack.i.bf16 %v330_v52, %v329_v51 }
  0x88   : > { %v359_v29 = vmul.f32 0.0, %v351_v28  ;;  %1061 = vrot.lane.b32.xlu0 %v1060_v26, %s1143_s8  ;;  %v355_v39 = vsel %vm354_vm1, %v351_v28, %v353_v33  ;;  %v361_v46 = vmul.f32 %v353_v33, %v1207_v11  ;;  %v662_v53 = vmul.f32 %v1216_v15, %v353_v33 }
  0x89   : > { %v360_v47 = vmul.f32 %v355_v39, %v1209_v12  ;;  %v661_v54 = vmul.f32 %v1218_v16, %v355_v39  ;;  %v1100_v2 = vpack.i.bf16 %v641_v60, %v640_v59 }
  0x8a   : > { %v1065_v30 = vpack.i.bf16 %v359_v29, %v359_v29 }
  0x8b   : > { %v386_v32 = vpop.permute.xlu0 %385  ;;  %v388_v48 = vpop.permute.xlu1 %387  ;;  %v1095_v55 = vpack.i.bf16 %v361_v46, %v360_v47  ;;  %v1105_v63 = vpack.i.bf16 %v662_v53, %v661_v54 }
  0x8c   : > { %v393_v34 = vmul.f32 %v386_v32, %v1209_v12  ;;  %v685_v35 = vmul.f32 %v1218_v16, %v386_v32  ;;  %1066 = vrot.lane.b32.xlu1 %v1065_v30, %s1142_s29  ;;  %v389_v57 = vsel %vm371_vm3, %v386_v32, %v388_v48  ;;  %v395_v61 = vmul.f32 0.0, %v388_v48 }
  0x8d   : > { %v686_v62 = vmul.f32 %v1216_v15, %v389_v57  ;;  %v394_v3 = vmul.f32 %v389_v57, %v1207_v11 }
  0x8e   : > { %v1070_v38 = vpack.i.bf16 %v685_v35, %v393_v34 }
  0x8f   : > { %v415_v40 = vpop.permute.xlu0 %414  ;;  %v417_v58 = vpop.permute.xlu1 %416  ;;  %v1115_v6 = vpack.i.bf16 %v395_v61, %v686_v62  ;;  %v1110_v10 = vpack.i.bf16 %v395_v61, %v394_v3 }
  0x90   : > { %v422_v41 = vmul.f32 %v415_v40, %v1209_v12  ;;  %v706_v42 = vmul.f32 %v1218_v16, %v415_v40  ;;  %1071 = vrot.lane.b32.xlu0 %v1070_v38, %s1141_s27  ;;  %v418_v1 = vsel %vm340_vm4, %v415_v40, %v417_v58  ;;  %v424_v4 = vmul.f32 0.0, %v417_v58 }
  0x91   : > { %v423_v5 = vmul.f32 %v418_v1, %v1207_v11  ;;  %v707_v8 = vmul.f32 %v1216_v15, %v418_v1 }
  0x92   : > { %v1075_v49 = vpack.i.bf16 %v706_v42, %v422_v41 }
  0x93   : > { %v465_v7 = vpop.permute.xlu1 %464  ;;  %v1120_v9 = vpack.i.bf16 %v424_v4, %v423_v5  ;;  %v463_v13 = vpop.permute.xlu0 %462  ;;  %v1125_v18 = vpack.i.bf16 %v424_v4, %v707_v8 }
  0x94   : > { %1076 = vrot.lane.b32.xlu1 %v1075_v49, %s1139_s24  ;;  %1081 = vrot.lane.b32.xlu0 %v1080_v50, %s1144_s9  ;;  %v472_v14 = vmul.f32 0.0, %v465_v7  ;;  %v466_v17 = vsel %vm281_vm5, %v463_v13, %v465_v7  ;;  %v745_v20 = vmul.f32 %v1218_v16, %v463_v13  ;;  %v470_v22 = vmul.f32 %v463_v13, %v1209_v12 }
  0x95   : > { %v471_v19 = vmul.f32 %v466_v17, %v1207_v11  ;;  %v746_v21 = vmul.f32 %v1216_v15, %v466_v17 }
  0x97   : > { %v1276_v23 = vpop.permute.xlu0 %1041  ;;  %v1027_v25 = vpop.permute.xlu1 %1026 }
  0x98   : > { %1096 = vrot.lane.b32.xlu1 %v1095_v55, %s1142_s29  ;;  %1086 = vrot.lane.b32.xlu0 %v1085_v56, %s1144_s9  ;;  %v1029_v33 = vunpack.i.h.bf16 %v1027_v25  ;;  %v1028_v34 = vunpack.i.l.bf16 %v1027_v25  ;;  %v1044_v5 = vunpack.i.h.bf16 %v1276_v23 }
  0x9a   : > { %v302_v45 = vsel %vm300_vm6, %v1028_v34, %v1029_v33 }
  0x9b   : > { %v1278_v24 = vpop.permute.xlu0 %1046  ;;  %v1032_v27 = vpop.permute.xlu1 %1031 }
  0x9c   : > { %1106 = vrot.lane.b32.xlu1 %v1105_v63, %s1142_s29  ;;  %1091 = vrot.lane.b32.xlu0 %v1090_v0, %s1143_s8  ;;  %v1034_v41 = vunpack.i.h.bf16 %v1032_v27  ;;  %v1033_v42 = vunpack.i.l.bf16 %v1032_v27 }
  0x9e   : > { %v631_v55 = vsel %vm300_vm6, %v1033_v42, %v1034_v41 }
  0x9f   : > { %v1280_v26 = vpop.permute.xlu0 %1051  ;;  %v1037_v30 = vpop.permute.xlu1 %1036 }
  0xa0   : > { %1116 = vrot.lane.b32.xlu1 %v1115_v6, %s1141_s27  ;;  %1101 = vrot.lane.b32.xlu0 %v1100_v2, %s1143_s8  ;;  %v1038_v35 = vunpack.i.l.bf16 %v1037_v30  ;;  %v1039_v43 = vunpack.i.h.bf16 %v1037_v30  ;;  %v1043_v6 = vunpack.i.l.bf16 %v1276_v23  ;;  %v243_v23 = vld [vmem:[%s1364_s1] sm:$0xff] }
  0xa2   : > { %v301_v47 = vsel %vm300_vm6, %v1038_v35, %v1028_v34  ;;  %v630_v56 = vsel %vm300_vm6, %v1039_v43, %v1033_v42  ;;  %v454_v34 = vsel %vm452_vm7, %v1043_v6, %v1044_v5 }
  0xa4   : > { %1121 = vrot.lane.b32.xlu1 %v1120_v9, %s1139_s24  ;;  %1111 = vrot.lane.b32.xlu0 %v1110_v10, %s1141_s27 }
  0xa8   : > { %1126 = vrot.lane.b32.xlu1 %v1125_v18, %s1139_s24  ;;  %480 = vrot.lane.b32.xlu0 %v472_v14, %s1140_s25 }
  0xac   : > { %478 = vrot.lane.b32.xlu1 %v471_v19, %s1140_s25  ;;  %755 = vrot.lane.b32.xlu0 %v472_v14, %s1140_s25 }
  0xb0   : > { %753 = vrot.lane.b32.xlu1 %v746_v21, %s1140_s25  ;;  %751 = vrot.lane.b32.xlu0 %v745_v20, %s1140_s25 }
  0xb4   : > { %476 = vrot.lane.b32.xlu1 %v470_v22, %s1140_s25 }
  0xf6   : > { %v1057_v28 = vpop.permute.xlu0 %1056 }
  0xf7   : > { %v1058_v38 = vunpack.i.l.bf16 %v1057_v28  ;;  %v1059_v52 = vunpack.i.h.bf16 %v1057_v28 }
  0xfa   : > { %v1282_v29 = vpop.permute.xlu0 %1061 }
  0xfb   : > { %v1063_v1 = vunpack.i.l.bf16 %v1282_v29  ;;  %v1064_v17 = vunpack.i.h.bf16 %v1282_v29 }
  0xfe   : > { %v1284_v31 = vpop.permute.xlu1 %1066 }
  0xff   : > { %v1068_v2 = vunpack.i.l.bf16 %v1284_v31  ;;  %v1069_v18 = vunpack.i.h.bf16 %v1284_v31 }
 0x102   : > { %v1286_v32 = vpop.permute.xlu0 %1071 }
 0x106   : > { %v1288_v36 = vpop.permute.xlu1 %1076  ;;  %v1082_v37 = vpop.permute.xlu0 %1081 }
 0x107   : > { %v1084_v39 = vunpack.i.h.bf16 %v1082_v37  ;;  %v1083_v40 = vunpack.i.l.bf16 %v1082_v37 }
 0x109   : > { %v283_v44 = vsel %vm281_vm5, %v1083_v40, %v1084_v39  ;;  %v282_v46 = vsel %vm281_vm5, %v1058_v38, %v1083_v40  ;;  %v1074_v38 = vunpack.i.h.bf16 %v1286_v32  ;;  %v1073_v39 = vunpack.i.l.bf16 %v1286_v32 }
 0x10a   : > { %v1097_v48 = vpop.permute.xlu1 %1096  ;;  %v1087_v49 = vpop.permute.xlu0 %1086  ;;  %v976_v50 = vpack.c.bf16 %v302_v45, %v283_v44  ;;  %v978_v51 = vpack.c.bf16 %v301_v47, %v282_v46 }
 0x10b   : > { %v1089_v53 = vunpack.i.h.bf16 %v1087_v49  ;;  %v1088_v54 = vunpack.i.l.bf16 %v1087_v49  ;;  %v1099_v57 = vunpack.i.h.bf16 %v1097_v48  ;;  %v1098_v58 = vunpack.i.l.bf16 %v1097_v48 }
 0x10c   : > { %977 = vmatprep.subr.bf16.mxu0 %v976_v50  ;;  %v1049_v48 = vunpack.i.h.bf16 %v1278_v24  ;;  %v1048_v49 = vunpack.i.l.bf16 %v1278_v24 }
 0x10d   : > { %979 = vmatpush1.bf16.msra.mxu0 %v978_v51  ;;  %v613_v59 = vsel %vm281_vm5, %v1088_v54, %v1089_v53  ;;  %v612_v60 = vsel %vm281_vm5, %v1059_v52, %v1088_v54  ;;  %v373_v10 = vsel %vm371_vm3, %v1098_v58, %v1099_v57  ;;  %v372_v14 = vsel %vm371_vm3, %v1068_v2, %v1098_v58 }
 0x10e   : > { %v1107_v61 = vpop.permute.xlu1 %1106  ;;  %v1092_v62 = vpop.permute.xlu0 %1091  ;;  %v992_v63 = vpack.c.bf16 %v631_v55, %v613_v59  ;;  %v994_v0 = vpack.c.bf16 %v630_v56, %v612_v60  ;;  %v1054_v52 = vunpack.i.h.bf16 %v1280_v26  ;;  %v1053_v55 = vunpack.i.l.bf16 %v1280_v26 }
 0x10f   : > { %v1094_v3 = vunpack.i.h.bf16 %v1092_v62  ;;  %v1093_v4 = vunpack.i.l.bf16 %v1092_v62  ;;  %v1109_v7 = vunpack.i.h.bf16 %v1107_v61  ;;  %v1108_v8 = vunpack.i.l.bf16 %v1107_v61 }
 0x110   : > { %993 = vmatprep.subr.bf16.mxu1 %v992_v63  ;;  %v1078_v56 = vunpack.i.l.bf16 %v1288_v36  ;;  %v1079_v59 = vunpack.i.h.bf16 %v1288_v36 }
 0x111   : > { %995 = vmatpush1.bf16.msra.mxu1 %v994_v0  ;;  %v342_v9 = vsel %vm340_vm4, %v1093_v4, %v1094_v3  ;;  %v341_v13 = vsel %vm340_vm4, %v1063_v1, %v1093_v4  ;;  %v673_v33 = vsel %vm371_vm3, %v1108_v8, %v1109_v7  ;;  %v672_v35 = vsel %vm371_vm3, %v1069_v18, %v1108_v8 }
 0x112   : > { %v1117_v19 = vpop.permute.xlu1 %1116  ;;  %v1102_v20 = vpop.permute.xlu0 %1101  ;;  %v980_v21 = vpack.c.bf16 %v373_v10, %v342_v9  ;;  %v982_v22 = vpack.c.bf16 %v372_v14, %v341_v13  ;;  %v737_v0 = vsel %vm452_vm7, %v1048_v49, %v1049_v48 }
 0x113   : > { %v1119_v25 = vunpack.i.h.bf16 %v1117_v19  ;;  %v1118_v27 = vunpack.i.l.bf16 %v1117_v19  ;;  %v1104_v28 = vunpack.i.h.bf16 %v1102_v20  ;;  %v1103_v30 = vunpack.i.l.bf16 %v1102_v20 }
 0x114   : > { %981 = vmatprep.subr.bf16.mxu0 %v980_v21 }
 0x115   : > { %983 = vmatpush1.bf16.msra.mxu0 %v982_v22  ;;  %v652_v29 = vsel %vm340_vm4, %v1103_v30, %v1104_v28  ;;  %v651_v31 = vsel %vm340_vm4, %v1064_v17, %v1103_v30  ;;  %v698_v37 = vsel %vm354_vm1, %v1118_v27, %v1119_v25  ;;  %v697_v51 = vsel %vm354_vm1, %v1074_v38, %v1118_v27 }
 0x116   : > { %v1122_v40 = vpop.permute.xlu1 %1121  ;;  %v1112_v41 = vpop.permute.xlu0 %1111  ;;  %v996_v42 = vpack.c.bf16 %v673_v33, %v652_v29  ;;  %v998_v43 = vpack.c.bf16 %v672_v35, %v651_v31  ;;  %v1000_v50 = vpack.c.bf16 %v698_v37, %v1216_v15  ;;  %v1002_v62 = vpack.c.bf16 %v697_v51, %v1218_v16 }
 0x117   : > { %v1124_v44 = vunpack.i.h.bf16 %v1122_v40  ;;  %v1123_v45 = vunpack.i.l.bf16 %v1122_v40  ;;  %v1114_v46 = vunpack.i.h.bf16 %v1112_v41  ;;  %v1113_v47 = vunpack.i.l.bf16 %v1112_v41 }
 0x118   : > { %997 = vmatprep.subr.bf16.mxu1 %v996_v42  ;;  %v453_v16 = vsel %vm452_vm7, %v1053_v55, %v1043_v6 }
 0x119   : > { %999 = vmatpush1.bf16.msra.mxu1 %v998_v43  ;;  %v406_v32 = vsel %vm354_vm1, %v1113_v47, %v1114_v46  ;;  %v405_v53 = vsel %vm354_vm1, %v1073_v39, %v1113_v47  ;;  %v435_v54 = vsel %vm323_vm2, %v1123_v45, %v1124_v44  ;;  %v434_v26 = vsel %vm323_vm2, %v1078_v56, %v1123_v45 }
 0x11a   : > { %v1127_v57 = vpop.permute.xlu1 %1126  ;;  %v481_v24 = vpop.permute.xlu0 %480  ;;  %1001 = vmatprep.subr.bf16.mxu1 %v1000_v50  ;;  %v984_v15 = vpack.c.bf16 %v406_v32, %v1207_v11  ;;  %v986_v58 = vpack.c.bf16 %v405_v53, %v1209_v12  ;;  %v988_v63 = vpack.c.bf16 %v454_v34, %v435_v54  ;;  %v736_v12 = vsel %vm452_vm7, %v1054_v52, %v1048_v49 }
 0x11b   : > { %v1129_v60 = vunpack.i.h.bf16 %v1127_v57  ;;  %v1128_v61 = vunpack.i.l.bf16 %v1127_v57  ;;  %v990_v5 = vpack.c.bf16 %v453_v16, %v434_v26 }
 0x11c   : > { %985 = vmatprep.subr.bf16.mxu0 %v984_v15 }
 0x11d   : > { %987 = vmatpush1.bf16.msra.mxu0 %v986_v58  ;;  %1003 = vmatpush1.bf16.msra.mxu1 %v1002_v62  ;;  %v719_v1 = vsel %vm323_vm2, %v1128_v61, %v1129_v60  ;;  %v718_v11 = vsel %vm323_vm2, %v1079_v59, %v1128_v61 }
 0x11e   : > { %v479_v2 = vpop.permute.xlu1 %478  ;;  %v756_v36 = vpop.permute.xlu0 %755  ;;  %989 = vmatprep.subr.bf16.mxu0 %v988_v63  ;;  %v1004_v3 = vpack.c.bf16 %v737_v0, %v719_v1  ;;  %v1006_v4 = vpack.c.bf16 %v736_v12, %v718_v11 }
 0x11f   : > { %v483_v7 = vsel %vm264_vm0, %v479_v2, %v481_v24 }
 0x120   : > { %1005 = vmatprep.subr.bf16.mxu1 %v1004_v3 }
 0x121   : > { %991 = vmatpush1.bf16.msra.mxu0 %v990_v5  ;;  %1007 = vmatpush1.bf16.msra.mxu1 %v1006_v4 }
 0x122   : > { %v754_v8 = vpop.permute.xlu1 %753  ;;  %v752_v9 = vpop.permute.xlu0 %751  ;;  %526 = vmatprep.subr.mxu0 %v483_v7 }
 0x123   : > { %v758_v10 = vsel %vm264_vm0, %v754_v8, %v756_v36  ;;  %v757_v13 = vsel %vm264_vm0, %v752_v9, %v754_v8 }
 0x124   : > { %797 = vmatprep.subr.mxu1 %v758_v10 }
 0x125   : > { %798 = vmatpush1.msra.mxu1 %v757_v13 }
 0x126   : > { %v477_v6 = vpop.permute.xlu1 %476  ;;  %972 = vmatmul.mubr.msk.f32.vlgmr.msra.gmra.mrb[0].mxu1 %vm506_vm8, %v243_v23 }
 0x127   : > { %v482_v14 = vsel %vm264_vm0, %v477_v6, %v479_v2 }
 0x128   : > { %527 = vmatpush1.msra.mxu0 %v482_v14 }
 0x129   : > { %969 = vmatmul.mubr.msk.f32.vlgmr.msra.gmra.mrb[0].mxu0 %vm506_vm8, %v243_v23 }
 0x1f9   : > { %v847_v17 = vpop.f32.mrb[0].mxu1 }
 0x1fa   : > { %v849_v18 = vpop.f32.mrb[1].mxu1 }
 0x1fb   : > { %v852_v19 = vadd.f32 %v849_v18, %v847_v17 }
 0x1fc   : > { %v576_v20 = vpop.f32.mrb[0].mxu0 }
 0x1fd   : > { %853 = vadd.xlane.f32.xlu0 %v852_v19  ;;  %v578_v21 = vpop.f32.mrb[1].mxu0 }
 0x1fe   : > { %v581_v22 = vadd.f32 %v578_v21, %v576_v20 }
 0x200   : > { %582 = vadd.xlane.f32.xlu1 %v581_v22 }
 0x28a   : > { %v854_v25 = vpop.xlane.xlu0 %853 }
 0x28b   : > { %v855_v27 = vmul.f32 0.00390625, %v854_v25 }
 0x28d   : > { %v583_v28 = vpop.xlane.xlu1 %582  ;;  %v856_v30 = vsub.f32 %v847_v17, %v855_v27  ;;  %v857_v33 = vsub.f32 %v849_v18, %v855_v27 }
 0x28e   : > { %v584_v34 = vmul.f32 0.00390625, %v583_v28 }
 0x28f   : > { %v858_v29 = vmul.f32 %v856_v30, %v856_v30  ;;  %v859_v31 = vmul.f32 %v857_v33, %v857_v33 }
 0x290   : > { %v863_v35 = vadd.f32 %v855_v27, %v584_v34  ;;  %v585_v37 = vsub.f32 %v576_v20, %v584_v34  ;;  %v586_v38 = vsub.f32 %v578_v21, %v584_v34 }
 0x291   : > { %v860_v39 = vadd.f32 %v859_v31, %v858_v29 }
 0x292   : > { %v864_v40 = vmul.f32 0.5, %v863_v35  ;;  %v587_v41 = vmul.f32 %v585_v37, %v585_v37  ;;  %v588_v42 = vmul.f32 %v586_v38, %v586_v38 }
 0x293   : > { %861 = vadd.xlane.f32.xlu1 %v860_v39 }
 0x294   : > { %v589_v43 = vadd.f32 %v588_v42, %v587_v41  ;;  %v866_v44 = vsub.f32 %v584_v34, %v864_v40  ;;  %v868_v45 = vsub.f32 %v855_v27, %v864_v40  ;;  %873 = vst.msk [vmem:[%s234_s17] sm:$0xff] %vm371_vm3, %v864_v40 }
 0x296   : > { %590 = vadd.xlane.f32.xlu0 %v589_v43  ;;  %v867_v46 = vmul.f32 %v866_v44, %v866_v44  ;;  %v869_v47 = vmul.f32 %v868_v45, %v868_v45 }
 0x298   : > { %v870_v48 = vadd.f32 %v869_v47, %v867_v46 }
 0x29a   : > { %v871_v51 = vmul.f32 256.0, %v870_v48 }
 0x320   : > { %v862_v49 = vpop.xlane.xlu1 %861 }
 0x323   : > { %v591_v50 = vpop.xlane.xlu0 %590 }
 0x324   : > { %v865_v52 = vadd.f32 %v862_v49, %v591_v50 }
 0x326   : > { %v872_v32 = vadd.f32 %v871_v51, %v865_v52 }
 0x328   : > { %874 = vst.msk [vmem:[%s238_s21] sm:$0xff] %vm371_vm3, %v872_v32 }
 0x329 PF: > { %s16_s18 = sadd.s32 1, %s1136_s18  }
 0x32a   : > { %p13_p5 = scmp.ge.s32.totalorder %s16_s18, 4  }
 0x32c   :  { %15 = sbr.rel (!%p13_p5) target bundleno = 1 (0x1), region = 79 }

// kernel: cbrblock_forward.3
= control target key start
LH: loop header
LB: loop body
LE: loop exit
PB: predicated region body
PF: predicated region fallthrough
CT: control target
= control target key end

     0   :  { %s1180_s21 = smov 0   ;;  %s1368_s0 = inlined_call_operand.vmem [shape: f32[4,8,256], index: 0, kind: input, shape index: {}]   ;;  %s1369_s1 = inlined_call_operand.vmem [shape: f32[8,72], index: 1, kind: input, shape index: {}]   ;;  %s1370_s2 = inlined_call_operand.vmem [shape: f32[1,256], index: 2, kind: input, shape index: {}]   ;;  %s1371_s3 = inlined_call_operand.vmem [shape: f32[1,256], index: 3, kind: input, shape index: {}]   ;;  %s1372_s4 = inlined_call_operand.vmem [shape: f32[8,1], index: 4, kind: input, shape index: {}]   ;;  %s1373_s5 = inlined_call_operand.vmem [shape: f32[8,1], index: 5, kind: input, shape index: {}]   ;;  %s1374_s6 = inlined_call_operand.vmem [shape: f32[4,8,256], index: 6, kind: output, shape index: {}]  }
   0x1 LB: > { %s949_s22 = sadd.s32 4294967295, %s1133_s21   ;;  %p953_p0 = scmp.ge.s32.totalorder %s1133_s21, 1  ;;  %s1133_s21 = sphi %s1180_s21, %s16_s21  }
   0x2   : > { %p214_p1 = scmp.lt.s32.totalorder %s1133_s21, 3 }
   0x4   : > { %p215_p2 = pnand %p953_p0, %p214_p1 }
   0x5   : > { %v275_v0 = vlaneseq (!%p215_p2)  ;;  %v1135_v2 = vmov (!%p215_p2), 0.0   ;;  %v263_v3 = vld [vmem:[%s1371_s3] sm:$0x3] (!%p215_p2)  ;;  %s1136_s27 = smov (!%p215_p2), 113   ;;  %s1137_s28 = smov (!%p215_p2), 111   ;;  %vm287_vm0 = vcmask (!%p215_p2), 908288  }
   0x6   : > { %218 = sbr.rel (%p215_p2) target bundleno = 518 (0x206), region = 44  ;;  %597 = vmatprep.mubr.f32.mxu0 (!%p215_p2), %v1135_v2  ;;  %875 = vmatprep.mubr.f32.mxu1 (!%p215_p2), %v1135_v2  ;;  %v262_v4 = vld [vmem:[%s1370_s2] sm:$0x3] (!%p215_p2)  ;;  %s954_s29 = sshll.u32 (!%p215_p2), %s949_s22, 1  ;;  %vm377_vm1 = vcmask (!%p215_p2), 1039360   ;;  %vm346_vm2 = vcmask (!%p215_p2), 924672  }
   0x7   : > { %v276_v1 = vshrl.u32 (!%p215_p2), %v275_v0, 7  ;;  %p247_p3 = scmp.lt.s32.totalorder (!%p215_p2), %s954_s29, 3  ;;  %s1138_s30 = smov (!%p215_p2), 127   ;;  %vm394_vm3 = vcmask (!%p215_p2), 7168   ;;  %vm363_vm4 = vcmask (!%p215_p2), 121856   ;;  %vm304_vm5 = vcmask (!%p215_p2), 138240  }
   0x8   : > { %s1139_s8 = smov (!%p215_p2), 1   ;;  %s1140_s12 = smov (!%p215_p2), 15   ;;  %vm323_vm6 = vcmask (!%p215_p2), 130048   ;;  %vm475_vm7 = vcmask (!%p215_p2), 916480   ;;  %vm529_vm8 = vcmask (!%p215_p2), 588800  }
   0x9   : > { %v277_v5 = vsub.s32 (!%p215_p2), 0, %v276_v1  ;;  %v281_v6 = vsub.s32 (!%p215_p2), 1, %v276_v1  ;;  %s1141_s13 = smov (!%p215_p2), 17   ;;  %s1142_s14 = smov (!%p215_p2), 112  }
   0xa   : > { %s1143_s15 = smov (!%p215_p2), 16  }
   0xb   : > { %v337_v7 = vrot.slane (!%p215_p2), %v263_v3, %v277_v5  ;;  %v278_v8 = vrot.slane (!%p215_p2), %v262_v4, %v277_v5  ;;  %v341_v9 = vrot.slane (!%p215_p2), %v263_v3, %v281_v6  ;;  %v282_v10 = vrot.slane (!%p215_p2), %v262_v4, %v281_v6 }
   0xd   : > { %342 = vrot.lane.b32.xlu1 %v337_v7, %s1136_s27  ;;  %283 = vrot.lane.b32.xlu0 %v278_v8, %s1137_s28  ;;  %s1376_s29 = smov (!%p247_p3, %s954_s29), 3 }
   0xe   : > { %s968_s7 = sshll.u32 %s1376_s29, 4 }
   0xf   : > { %s251_s11 = scalar_lea.vmem %s1368_s0, %s968_s7  ;;  %s258_s25 = scalar_lea.vmem %s1374_s6, %s968_s7 }
  0x10   : > { %v1212_v11 = vld [vmem:[%s251_s11 + $0x8] sm:$0xff]  ;;  %v1214_v12 = vld [vmem:[%s251_s11] sm:$0xff]  ;;  %v1221_v15 = vld [vmem:[%s251_s11 + $0x18] sm:$0xff] }
  0x11   : > { %344 = vrot.lane.b32.xlu1 %v341_v9, %s1136_s27  ;;  %285 = vrot.lane.b32.xlu0 %v282_v10, %s1137_s28  ;;  %v1035_v13 = vpack.i.bf16 %v1135_v2, %v1212_v11  ;;  %v1020_v14 = vpack.i.bf16 %v1212_v11, %v1214_v12  ;;  %v1223_v16 = vld [vmem:[%s251_s11 + $0x10] sm:$0xff]  ;;  %v1040_v17 = vpack.i.bf16 %v1221_v15, %v1214_v12 }
  0x12   : > { %v1025_v18 = vpack.i.bf16 %v1223_v16, %v1135_v2  ;;  %v1030_v19 = vpack.i.bf16 %v1135_v2, %v1221_v15 }
  0x15   : > { %375 = vrot.lane.b32.xlu1 %v282_v10, %s1138_s30  ;;  %373 = vrot.lane.b32.xlu0 %v278_v8, %s1138_s30 }
  0x19   : > { %410 = vrot.lane.b32.xlu1 %v341_v9, %s1139_s8  ;;  %408 = vrot.lane.b32.xlu0 %v337_v7, %s1139_s8 }
  0x1d   : > { %439 = vrot.lane.b32.xlu1 %v282_v10, %s1140_s12  ;;  %437 = vrot.lane.b32.xlu0 %v278_v8, %s1140_s12 }
  0x21   : > { %487 = vrot.lane.b32.xlu1 %v341_v9, %s1141_s13  ;;  %485 = vrot.lane.b32.xlu0 %v337_v7, %s1141_s13 }
  0x25   : > { %1036 = vrot.lane.b32.xlu0 %v1035_v13, %s1142_s14  ;;  %1021 = vrot.lane.b32.xlu1 %v1020_v14, %s1143_s15 }
  0x29   : > { %1041 = vrot.lane.b32.xlu0 %v1040_v17, %s1142_s14  ;;  %1026 = vrot.lane.b32.xlu1 %v1025_v18, %s1143_s15 }
  0x2d   : > { %1046 = vrot.lane.b32.xlu0 %v1025_v18, %s1142_s14  ;;  %1031 = vrot.lane.b32.xlu1 %v1030_v19, %s1143_s15 }
  0x7f   : > { %v343_v20 = vpop.permute.xlu1 %342  ;;  %v284_v21 = vpop.permute.xlu0 %283 }
  0x80   : > { %v292_v25 = vmul.f32 0.0, %v284_v21  ;;  %v351_v33 = vmul.f32 0.0, %v343_v20 }
  0x83   : > { %v345_v22 = vpop.permute.xlu1 %344  ;;  %v286_v23 = vpop.permute.xlu0 %285 }
  0x84   : > { %v632_v24 = vmul.f32 %v1221_v15, %v286_v23  ;;  %v671_v30 = vmul.f32 %v1221_v15, %v345_v22  ;;  %v288_v39 = vsel %vm287_vm0, %v284_v21, %v286_v23  ;;  %v294_v47 = vmul.f32 %v286_v23, %v1212_v11 }
  0x85   : > { %v293_v46 = vmul.f32 %v288_v39, %v1214_v12  ;;  %v631_v51 = vmul.f32 %v1223_v16, %v288_v39  ;;  %v347_v53 = vsel %vm346_vm2, %v343_v20, %v345_v22  ;;  %v353_v57 = vmul.f32 %v345_v22, %v1212_v11 }
  0x86   : > { %v1050_v31 = vpack.i.bf16 %v292_v25, %v632_v24  ;;  %v1055_v38 = vpack.i.bf16 %v351_v33, %v671_v30  ;;  %v352_v56 = vmul.f32 %v347_v53, %v1214_v12  ;;  %v670_v63 = vmul.f32 %v1223_v16, %v347_v53  ;;  %v266_v24 = vld [vmem:[%s1373_s5] sm:$0xff] }
  0x87   : > { %v376_v26 = vpop.permute.xlu1 %375  ;;  %v374_v27 = vpop.permute.xlu0 %373  ;;  %v1075_v52 = vpack.i.bf16 %v294_v47, %v293_v46  ;;  %v1080_v58 = vpack.i.bf16 %v631_v51, %v292_v25  ;;  %v1144_v20 = vmov 0   ;;  %v265_v25 = vld [vmem:[%s1372_s4] sm:$0xff] }
  0x88   : > { %v692_v28 = vmul.f32 %v1221_v15, %v376_v26  ;;  %v382_v29 = vmul.f32 0.0, %v374_v27  ;;  %1051 = vrot.lane.b32.xlu0 %v1050_v31, %s1141_s13  ;;  %v378_v40 = vsel %vm377_vm1, %v374_v27, %v376_v26  ;;  %v384_v48 = vmul.f32 %v376_v26, %v1212_v11  ;;  %1125 = vset.pattern.permute.xlu1 %v1144_v20 }
  0x89   : > { %v383_v49 = vmul.f32 %v378_v40, %v1214_v12  ;;  %v691_v54 = vmul.f32 %v1223_v16, %v378_v40  ;;  %v1085_v0 = vpack.i.bf16 %v353_v57, %v352_v56  ;;  %v1095_v5 = vpack.i.bf16 %v670_v63, %v351_v33  ;;  %1126 = vset.pattern.permute.xlu0 %v1144_v20 }
  0x8a   : > { %v1060_v32 = vpack.i.bf16 %v382_v29, %v692_v28 }
  0x8b   : > { %v411_v34 = vpop.permute.xlu1 %410  ;;  %v409_v35 = vpop.permute.xlu0 %408  ;;  %v1090_v55 = vpack.i.bf16 %v384_v48, %v383_v49  ;;  %v1100_v60 = vpack.i.bf16 %v691_v54, %v382_v29 }
  0x8c   : > { %v418_v36 = vmul.f32 0.0, %v411_v34  ;;  %v715_v37 = vmul.f32 %v1223_v16, %v409_v35  ;;  %1061 = vrot.lane.b32.xlu1 %v1060_v32, %s1139_s8  ;;  %1056 = vrot.lane.b32.xlu0 %v1055_v38, %s1140_s12  ;;  %v412_v61 = vsel %vm394_vm3, %v409_v35, %v411_v34  ;;  %v416_v1 = vmul.f32 %v409_v35, %v1214_v12 }
  0x8d   : > { %v716_v2 = vmul.f32 %v1221_v15, %v412_v61  ;;  %v417_v4 = vmul.f32 %v412_v61, %v1212_v11 }
  0x8e   : > { %v1065_v43 = vpack.i.bf16 %v715_v37, %v418_v36 }
  0x8f   : > { %v440_v41 = vpop.permute.xlu1 %439  ;;  %v438_v42 = vpop.permute.xlu0 %437  ;;  %v1110_v7 = vpack.i.bf16 %v716_v2, %v416_v1  ;;  %v1105_v8 = vpack.i.bf16 %v418_v36, %v417_v4 }
  0x90   : > { %v447_v44 = vmul.f32 0.0, %v440_v41  ;;  %v736_v45 = vmul.f32 %v1223_v16, %v438_v42  ;;  %1066 = vrot.lane.b32.xlu0 %v1065_v43, %s1138_s30  ;;  %v441_v3 = vsel %vm363_vm4, %v438_v42, %v440_v41  ;;  %v445_v9 = vmul.f32 %v438_v42, %v1214_v12 }
  0x91   : > { %v446_v6 = vmul.f32 %v441_v3, %v1212_v11  ;;  %v737_v10 = vmul.f32 %v1221_v15, %v441_v3 }
  0x92   : > { %v1070_v50 = vpack.i.bf16 %v736_v45, %v447_v44 }
  0x93   : > { %v486_v59 = vpop.permute.xlu0 %485  ;;  %v488_v13 = vpop.permute.xlu1 %487  ;;  %v1115_v14 = vpack.i.bf16 %v447_v44, %v446_v6  ;;  %v1120_v19 = vpack.i.bf16 %v737_v10, %v445_v9 }
  0x94   : > { %1071 = vrot.lane.b32.xlu1 %v1070_v50, %s1136_s27  ;;  %1076 = vrot.lane.b32.xlu0 %v1075_v52, %s1141_s13  ;;  %v493_v62 = vmul.f32 %v486_v59, %v1214_v12  ;;  %v495_v17 = vmul.f32 0.0, %v488_v13  ;;  %v489_v18 = vsel %vm304_vm5, %v486_v59, %v488_v13  ;;  %v775_v23 = vmul.f32 %v1223_v16, %v486_v59 }
  0x95   : > { %v776_v21 = vmul.f32 %v1221_v15, %v489_v18  ;;  %v494_v22 = vmul.f32 %v489_v18, %v1212_v11 }
  0x97   : > { %v1286_v26 = vpop.permute.xlu0 %1036  ;;  %v1022_v27 = vpop.permute.xlu1 %1021 }
  0x98   : > { %1091 = vrot.lane.b32.xlu1 %v1090_v55, %s1139_s8  ;;  %1081 = vrot.lane.b32.xlu0 %v1080_v58, %s1141_s13  ;;  %v1024_v37 = vunpack.i.h.bf16 %v1022_v27  ;;  %v1023_v38 = vunpack.i.l.bf16 %v1022_v27  ;;  %v1039_v49 = vunpack.i.h.bf16 %v1286_v26  ;;  %v1038_v50 = vunpack.i.l.bf16 %v1286_v26 }
  0x9a   : > { %v325_v48 = vsel %vm323_vm6, %v1023_v38, %v1024_v37  ;;  %v477_v18 = vsel %vm475_vm7, %v1038_v50, %v1039_v49 }
  0x9b   : > { %v1288_v28 = vpop.permute.xlu0 %1041  ;;  %v1027_v29 = vpop.permute.xlu1 %1026 }
  0x9c   : > { %1101 = vrot.lane.b32.xlu1 %v1100_v60, %s1139_s8  ;;  %1086 = vrot.lane.b32.xlu0 %v1085_v0, %s1140_s12  ;;  %v1029_v43 = vunpack.i.h.bf16 %v1027_v29  ;;  %v1028_v44 = vunpack.i.l.bf16 %v1027_v29 }
  0x9e   : > { %v324_v59 = vsel %vm323_vm6, %v1028_v44, %v1023_v38 }
  0x9f   : > { %v1290_v30 = vpop.permute.xlu0 %1046  ;;  %v1032_v31 = vpop.permute.xlu1 %1031 }
  0xa0   : > { %499 = vrot.lane.b32.xlu1 %v493_v62, %s1137_s28  ;;  %1096 = vrot.lane.b32.xlu0 %v1095_v5, %s1140_s12  ;;  %v1034_v45 = vunpack.i.h.bf16 %v1032_v31  ;;  %v1033_v46 = vunpack.i.l.bf16 %v1032_v31 }
  0xa2   : > { %v661_v60 = vsel %vm323_vm6, %v1029_v43, %v1033_v46  ;;  %v660_v61 = vsel %vm323_vm6, %v1034_v45, %v1029_v43 }
  0xa4   : > { %1111 = vrot.lane.b32.xlu1 %v1110_v7, %s1138_s30  ;;  %1106 = vrot.lane.b32.xlu0 %v1105_v8, %s1138_s30 }
  0xa8   : > { %1116 = vrot.lane.b32.xlu1 %v1115_v14, %s1136_s27  ;;  %503 = vrot.lane.b32.xlu0 %v495_v17, %s1137_s28 }
  0xac   : > { %1121 = vrot.lane.b32.xlu1 %v1120_v19, %s1136_s27  ;;  %783 = vrot.lane.b32.xlu0 %v776_v21, %s1137_s28 }
  0xb0   : > { %501 = vrot.lane.b32.xlu1 %v494_v22, %s1137_s28  ;;  %781 = vrot.lane.b32.xlu0 %v775_v23, %s1137_s28 }
  0xb4   : > { %785 = vrot.lane.b32.xlu1 %v495_v17, %s1137_s28  ;;  %613 = vperm.xlu0 %1126, %v266_v24  }
  0xb8   : > { %606 = vperm.xlu1 %1125, %v265_v25  }
  0xfa   : > { %v1052_v32 = vpop.permute.xlu0 %1051 }
  0xfb   : > { %v1054_v53 = vunpack.i.h.bf16 %v1052_v32  ;;  %v1053_v54 = vunpack.i.l.bf16 %v1052_v32 }
  0xfe   : > { %v1292_v33 = vpop.permute.xlu0 %1056  ;;  %v1294_v34 = vpop.permute.xlu1 %1061 }
  0xff   : > { %v1064_v13 = vunpack.i.h.bf16 %v1294_v34  ;;  %v1059_v19 = vunpack.i.h.bf16 %v1292_v33  ;;  %v1058_v20 = vunpack.i.l.bf16 %v1292_v33  ;;  %v1063_v21 = vunpack.i.l.bf16 %v1294_v34 }
 0x102   : > { %v1296_v35 = vpop.permute.xlu0 %1066 }
 0x103   : > { %v1069_v24 = vunpack.i.h.bf16 %v1296_v35  ;;  %v1068_v25 = vunpack.i.l.bf16 %v1296_v35 }
 0x106   : > { %v1298_v36 = vpop.permute.xlu1 %1071  ;;  %v1077_v39 = vpop.permute.xlu0 %1076 }
 0x107   : > { %v1079_v40 = vunpack.i.h.bf16 %v1077_v39  ;;  %v1078_v41 = vunpack.i.l.bf16 %v1077_v39 }
 0x109   : > { %v306_v47 = vsel %vm304_vm5, %v1078_v41, %v1079_v40 }
 0x10a   : > { %v1092_v42 = vpop.permute.xlu1 %1091  ;;  %v1082_v51 = vpop.permute.xlu0 %1081  ;;  %v970_v52 = vpack.c.bf16 %v325_v48, %v306_v47 }
 0x10b   : > { %v1084_v55 = vunpack.i.h.bf16 %v1082_v51  ;;  %v1083_v56 = vunpack.i.l.bf16 %v1082_v51  ;;  %v1094_v58 = vunpack.i.h.bf16 %v1092_v42  ;;  %v1093_v62 = vunpack.i.l.bf16 %v1092_v42 }
 0x10c   : > { %971 = vmatprep.subr.bf16.mxu0 %v970_v52  ;;  %v1044_v52 = vunpack.i.h.bf16 %v1288_v28 }
 0x10d   : > { %v305_v63 = vsel %vm304_vm5, %v1083_v56, %v1078_v41  ;;  %v643_v0 = vsel %vm304_vm5, %v1084_v55, %v1053_v54  ;;  %v642_v1 = vsel %vm304_vm5, %v1054_v53, %v1084_v55  ;;  %v396_v17 = vsel %vm394_vm3, %v1093_v62, %v1094_v58 }
 0x10e   : > { %v1102_v57 = vpop.permute.xlu1 %1101  ;;  %v1087_v2 = vpop.permute.xlu0 %1086  ;;  %v972_v3 = vpack.c.bf16 %v324_v59, %v305_v63  ;;  %v986_v4 = vpack.c.bf16 %v661_v60, %v643_v0  ;;  %v988_v5 = vpack.c.bf16 %v660_v61, %v642_v1  ;;  %v1043_v53 = vunpack.i.l.bf16 %v1288_v28 }
 0x10f   : > { %v1089_v6 = vunpack.i.h.bf16 %v1087_v2  ;;  %v1088_v7 = vunpack.i.l.bf16 %v1087_v2  ;;  %v1104_v9 = vunpack.i.h.bf16 %v1102_v57  ;;  %v1103_v10 = vunpack.i.l.bf16 %v1102_v57 }
 0x110   : > { %973 = vmatpush1.bf16.msra.mxu0 %v972_v3  ;;  %987 = vmatprep.subr.bf16.mxu1 %v986_v4  ;;  %v1048_v56 = vunpack.i.l.bf16 %v1290_v30  ;;  %v1074_v1 = vunpack.i.h.bf16 %v1298_v36  ;;  %v1073_v2 = vunpack.i.l.bf16 %v1298_v36 }
 0x111   : > { %989 = vmatpush1.bf16.msra.mxu1 %v988_v5  ;;  %v365_v14 = vsel %vm363_vm4, %v1088_v7, %v1089_v6  ;;  %v395_v37 = vsel %vm394_vm3, %v1103_v10, %v1093_v62  ;;  %v703_v38 = vsel %vm394_vm3, %v1104_v9, %v1063_v21  ;;  %v702_v39 = vsel %vm394_vm3, %v1064_v13, %v1104_v9 }
 0x112   : > { %v1310_v8 = vpop.permute.xlu1 %499  ;;  %v1097_v22 = vpop.permute.xlu0 %1096  ;;  %v974_v23 = vpack.c.bf16 %v396_v17, %v365_v14  ;;  %v264_v17 = vld [vmem:[%s1369_s1] sm:$0xff] }
 0x113   : > { %v1099_v27 = vunpack.i.h.bf16 %v1097_v22  ;;  %v1098_v29 = vunpack.i.l.bf16 %v1097_v22 }
 0x114   : > { %975 = vmatprep.subr.bf16.mxu0 %v974_v23 }
 0x115   : > { %v364_v34 = vsel %vm363_vm4, %v1098_v29, %v1088_v7  ;;  %v682_v40 = vsel %vm363_vm4, %v1099_v27, %v1058_v20  ;;  %v681_v41 = vsel %vm363_vm4, %v1059_v19, %v1099_v27 }
 0x116   : > { %v1112_v31 = vpop.permute.xlu1 %1111  ;;  %v1107_v42 = vpop.permute.xlu0 %1106  ;;  %v976_v35 = vpack.c.bf16 %v395_v37, %v364_v34  ;;  %v990_v43 = vpack.c.bf16 %v703_v38, %v682_v40  ;;  %v992_v44 = vpack.c.bf16 %v702_v39, %v681_v41 }
 0x117   : > { %v1114_v32 = vunpack.i.h.bf16 %v1112_v31  ;;  %v1113_v33 = vunpack.i.l.bf16 %v1112_v31  ;;  %v1109_v46 = vunpack.i.h.bf16 %v1107_v42  ;;  %v1108_v47 = vunpack.i.l.bf16 %v1107_v42 }
 0x118   : > { %977 = vmatpush1.bf16.msra.mxu0 %v976_v35  ;;  %991 = vmatprep.subr.bf16.mxu1 %v990_v43 }
 0x119   : > { %v728_v45 = vsel %vm377_vm1, %v1114_v32, %v1068_v25  ;;  %v727_v51 = vsel %vm377_vm1, %v1069_v24, %v1114_v32  ;;  %993 = vmatpush1.bf16.msra.mxu1 %v992_v44  ;;  %v429_v57 = vsel %vm377_vm1, %v1108_v47, %v1109_v46  ;;  %v428_v58 = vsel %vm377_vm1, %v1113_v33, %v1108_v47 }
 0x11a   : > { %v1117_v48 = vpop.permute.xlu1 %1116  ;;  %v994_v49 = vpack.c.bf16 %v728_v45, %v1221_v15  ;;  %v996_v59 = vpack.c.bf16 %v727_v51, %v1223_v16  ;;  %v1049_v15 = vunpack.i.h.bf16 %v1290_v30  ;;  %v504_v60 = vpop.permute.xlu0 %503  ;;  %v978_v61 = vpack.c.bf16 %v429_v57, %v1212_v11 }
 0x11b   : > { %v1119_v54 = vunpack.i.h.bf16 %v1117_v48  ;;  %v1118_v55 = vunpack.i.l.bf16 %v1117_v48  ;;  %v980_v28 = vpack.c.bf16 %v428_v58, %v1214_v12  ;;  %v476_v11 = vsel %vm475_vm7, %v1043_v53, %v1038_v50 }
 0x11c   : > { %995 = vmatprep.subr.bf16.mxu1 %v994_v49  ;;  %979 = vmatprep.subr.bf16.mxu0 %v978_v61  ;;  %v767_v16 = vsel %vm475_vm7, %v1044_v52, %v1048_v56  ;;  %v766_v36 = vsel %vm475_vm7, %v1049_v15, %v1044_v52 }
 0x11d   : > { %v458_v62 = vsel %vm346_vm2, %v1118_v55, %v1119_v54  ;;  %981 = vmatpush1.bf16.msra.mxu0 %v980_v28  ;;  %997 = vmatpush1.bf16.msra.mxu1 %v996_v59 }
 0x11e   : > { %v1122_v63 = vpop.permute.xlu1 %1121  ;;  %v982_v0 = vpack.c.bf16 %v477_v18, %v458_v62  ;;  %v784_v12 = vpop.permute.xlu0 %783 }
 0x11f   : > { %v1124_v3 = vunpack.i.h.bf16 %v1122_v63  ;;  %v1123_v4 = vunpack.i.l.bf16 %v1122_v63 }
 0x120   : > { %983 = vmatprep.subr.bf16.mxu0 %v982_v0 }
 0x121   : > { %v457_v30 = vsel %vm346_vm2, %v1123_v4, %v1118_v55  ;;  %v749_v5 = vsel %vm346_vm2, %v1124_v3, %v1073_v2  ;;  %v748_v6 = vsel %vm346_vm2, %v1074_v1, %v1124_v3 }
 0x122   : > { %v502_v7 = vpop.permute.xlu1 %501  ;;  %v984_v9 = vpack.c.bf16 %v476_v11, %v457_v30  ;;  %v998_v10 = vpack.c.bf16 %v767_v16, %v749_v5  ;;  %v1000_v13 = vpack.c.bf16 %v766_v36, %v748_v6  ;;  %v782_v50 = vpop.permute.xlu0 %781 }
 0x123   : > { %v506_v26 = vsel %vm287_vm0, %v502_v7, %v504_v60  ;;  %v505_v18 = vsel %vm287_vm0, %v1310_v8, %v502_v7  ;;  %v787_v20 = vsel %vm287_vm0, %v782_v50, %v784_v12 }
 0x124   : > { %985 = vmatpush1.bf16.msra.mxu0 %v984_v9  ;;  %999 = vmatprep.subr.bf16.mxu1 %v998_v10 }
 0x125   : > { %549 = vmatprep.subr.mxu0 %v506_v26  ;;  %1001 = vmatpush1.bf16.msra.mxu1 %v1000_v13 }
 0x126   : > { %v786_v14 = vpop.permute.xlu1 %785 }
 0x127   : > { %v788_v19 = vsel %vm287_vm0, %v784_v12, %v786_v14 }
 0x128   : > { %550 = vmatpush1.msra.mxu0 %v505_v18  ;;  %827 = vmatprep.subr.mxu1 %v788_v19 }
 0x129   : > { %960 = vmatmul.mubr.msk.f32.vlgmr.msra.gmra.mrb[0].mxu0 %vm529_vm8, %v264_v17  ;;  %828 = vmatpush1.msra.mxu1 %v787_v20 }
 0x12a   : > { %963 = vmatmul.mubr.msk.f32.vlgmr.msra.gmra.mrb[0].mxu1 %vm529_vm8, %v264_v17 }
 0x133   : > { %v614_v23 = vpop.permute.xlu0 %613 }
 0x137   : > { %v607_v21 = vpop.permute.xlu1 %606 }
 0x1fc   : > { %v599_v22 = vpop.f32.mrb[0].mxu0 }
 0x1fd   : > { %v609_v24 = vmul.f32 %v607_v21, %v599_v22  ;;  %v601_v25 = vpop.f32.mrb[1].mxu0  ;;  %v877_v27 = vpop.f32.mrb[0].mxu1 }
 0x1fe   : > { %v610_v29 = vmul.f32 %v607_v21, %v601_v25  ;;  %v882_v31 = vmul.f32 %v877_v27, %v607_v21  ;;  %v879_v32 = vpop.f32.mrb[1].mxu1 }
 0x1ff   : > { %v616_v8 = vadd.f32 %v614_v23, %v609_v24  ;;  %v883_v37 = vmul.f32 %v879_v32, %v607_v21 }
 0x200   : > { %v617_v38 = vadd.f32 %v614_v23, %v610_v29  ;;  %v884_v39 = vadd.f32 %v882_v31, %v614_v23 }
 0x201   : > { %v618_v33 = vmax.f32 %v616_v8, 0.0  ;;  %v885_v34 = vadd.f32 %v883_v37, %v614_v23 }
 0x202   : > { %v619_v40 = vmax.f32 %v617_v38, 0.0  ;;  %v886_v41 = vmax.f32 %v884_v39, 0.0 }
 0x203   : > { %620 = vst [vmem:[%s258_s25] sm:$0xff] %v618_v33  ;;  %v887_v42 = vmax.f32 %v885_v34, 0.0 }
 0x204   : > { %621 = vst [vmem:[%s258_s25 + $0x8] sm:$0xff] %v619_v40  ;;  %964 = vst [vmem:[%s258_s25 + $0x10] sm:$0xff] %v886_v41 }
 0x205   : > { %965 = vst [vmem:[%s258_s25 + $0x18] sm:$0xff] %v887_v42 }
 0x206 PF: > { %s16_s21 = sadd.s32 1, %s1133_s21  }
 0x207   : > { %p13_p4 = scmp.ge.s32.totalorder %s16_s21, 4  }
 0x209   :  { %15 = sbr.rel (!%p13_p4) target bundleno = 1 (0x1), region = 76 }

</bundles_post_ra>
